<compile_context>
chip_gen: v7x
topology: tpu7x:2x2x1
jax: 0.10.0
libtpu: 0.0.40
codegen_flags: <defaults>
</compile_context>

<pallas_src>
import functools

import jax
import jax.numpy as jnp
from jax.experimental import pallas as pl
from jax.experimental.pallas import tpu as pltpu


def _round_up(x, m):
    return (x + m - 1) // m * m


# ------------------------------- Pallas kernel ------------------------------ #

def _resnet_block_kernel(x_ref, w1_ref, ws_ref, b1_ref, w2_ref, b2s_ref, o_ref,
                         *, H, W, TH, cin_p, cout_p):
    """relu( shortcut(x) + conv3x3->BN->relu->conv3x3->BN (x) ) for one H-tile.

    BN scales are pre-folded into the conv weights host-side; only per-channel
    biases enter here (conv2 + shortcut biases already summed).
    """
    t = pl.program_id(1)
    M = TH * W                 # output rows this step
    M1 = (TH + 2) * W          # conv1 rows (one halo row above/below for conv2)
    K1 = 9 * cin_p

    # Input window: padded rows [t*TH, t*TH + TH + 4) of the resident image.
    r0 = pl.multiple_of(t * TH, TH)
    xw = x_ref[0, pl.ds(r0, TH + 4), :, :]               # (TH+4, W+2, cin_p) bf16

    # ---- conv1 im2col (in VMEM/vregs), channel = kw*3*cin_p + kh*cin_p + c --
    xh = jnp.concatenate([xw[kh:kh + TH + 2] for kh in range(3)], axis=-1)
    im1 = jnp.concatenate([xh[:, kw:kw + W, :] for kw in range(3)], axis=-1)
    im1 = im1.reshape(M1, K1)

    # ---- conv1 (BN scale folded) + bias + ReLU: single K=9*cin_p matmul -----
    h1 = jnp.dot(im1, w1_ref[...], preferred_element_type=jnp.float32)
    h1 = jnp.maximum(h1 + b1_ref[...], 0.0).reshape(TH + 2, W, cout_p)

    # conv2 sees zero padding outside the image: mask halo rows that fall out.
    q = jax.lax.broadcasted_iota(jnp.int32, (TH + 2, 1, 1), 0) + (t * TH - 1)
    h1 = jnp.where((q >= 0) & (q < H), h1, 0.0).astype(jnp.bfloat16)
    # TODO(synk): h1 (and the HBM output) are bf16 while the reference keeps
    # f32 throughout; the test tolerance is set accordingly (deliberate).

    # ---- shortcut (1x1 proj, BN folded) + combined (conv2+shortcut) bias ----
    # Reuses the im2col center-tap columns: ws is zero-padded to K=9*cin_p.
    acc = jnp.dot(im1[W:W + M, :], ws_ref[...],
                  preferred_element_type=jnp.float32) + b2s_ref[...]

    # ---- conv2: three K=3*cout_p matmuls, one per kw tap --------------------
    # W shift via two small shifted copies; H shift is a free leading-dim slice;
    # the kh concat is along the 128-aligned channel axis (no relayout).
    zc = jnp.zeros((TH + 2, 1, cout_p), jnp.bfloat16)
    taps = (jnp.concatenate([zc, h1[:, :W - 1, :]], axis=1),   # col j-1
            h1,                                                # col j
            jnp.concatenate([h1[:, 1:, :], zc], axis=1))       # col j+1
    for kw in range(3):
        hs = taps[kw]
        op = jnp.concatenate([hs[kh:kh + TH] for kh in range(3)], axis=-1)
        acc += jnp.dot(op.reshape(M, 3 * cout_p), w2_ref[kw],
                       preferred_element_type=jnp.float32)

    # Lane-dense 2-D store (the output is a (B, H*W, cout_p) slab).
    o_ref[0] = jnp.maximum(acc, 0.0).astype(o_ref.dtype)


# ------------------------------ Host-side glue ------------------------------ #

def _fold_bn(bn, eps=1e-5):
    scale = bn["gamma"] * jax.lax.rsqrt(bn["var"] + eps)
    bias = bn["beta"] - bn["mean"] * scale
    return scale.astype(jnp.float32), bias.astype(jnp.float32)


def _prep3x3(w_oihw, scale, cin_p, cout_p):
    """BN-scale-folded 3x3 weights laid out (kw, kh, cin_p, cout_p)."""
    co, ci, _, _ = w_oihw.shape
    w = w_oihw * scale[:, None, None, None]
    w = jnp.transpose(w, (2, 3, 1, 0))                          # (kh, kw, ci, co)
    w = jnp.pad(w, ((0, 0), (0, 0), (0, cin_p - ci), (0, cout_p - co)))
    return jnp.transpose(w, (1, 0, 2, 3))                       # (kw, kh, ci, co)


def resnet_block_forward(x_nchw, params):
    """Fused Pallas forward for the projection-shortcut ResNet block (NCHW)."""
    x = jnp.transpose(x_nchw, (0, 2, 3, 1))                     # -> NHWC
    B, H, W, Cin = x.shape
    Cout = params["conv1_w"].shape[0]
    cin_p = _round_up(Cin, 16)        # bf16 sublane pack for the K operands
    cout_p = _round_up(Cout, 128)     # lane-dense output / dense MXU columns
    TH = 8 if H % 8 == 0 else H       # output rows per grid step
    nH = H // TH
    # TODO(synk): identity-shortcut variant (Cin == Cout, no projection conv)
    # is not special-cased; W is assumed to be a multiple of 8 here.

    s1, b1 = _fold_bn(params["bn1"])
    s2, b2 = _fold_bn(params["bn2"])
    ss, bs = _fold_bn(params["bns"])

    # conv1 weights: (9*cin_p, cout_p), row index = kw*3*cin_p + kh*cin_p + c.
    w1 = _prep3x3(params["conv1_w"], s1, cin_p, cout_p)
    w1 = w1.reshape(9 * cin_p, cout_p).astype(jnp.bfloat16)
    # conv2 weights: (3, 3*cout_p, cout_p), [kw] row index = kh*cout_p + c.
    w2 = _prep3x3(params["conv2_w"], s2, cout_p, cout_p)
    w2 = w2.reshape(3, 3 * cout_p, cout_p).astype(jnp.bfloat16)
    # shortcut 1x1: zero-padded into the center-tap rows of the conv1 im2col.
    wsf = (params["convs_w"][:, :, 0, 0] * ss[:, None]).T       # (Cin, Cout)
    wsf = jnp.pad(wsf, ((0, cin_p - Cin), (0, cout_p - Cout)))
    ws = jnp.zeros((9 * cin_p, cout_p), jnp.float32)
    ws = ws.at[4 * cin_p:5 * cin_p].set(wsf).astype(jnp.bfloat16)

    b1p = jnp.pad(b1, (0, cout_p - Cout)).reshape(1, cout_p)
    b2sp = jnp.pad(b2 + bs, (0, cout_p - Cout)).reshape(1, cout_p)   # folded bias

    # Spatial halo: 2 rows (conv1 + conv2's extra halo row), 1 column; channel
    # pad to cin_p; bf16 matmul operands.
    xp = jnp.pad(x, ((0, 0), (2, 2), (1, 1), (0, cin_p - Cin))).astype(jnp.bfloat16)

    kern = functools.partial(_resnet_block_kernel, H=H, W=W, TH=TH,
                             cin_p=cin_p, cout_p=cout_p)
    out = pl.pallas_call(
        kern,
        out_shape=jax.ShapeDtypeStruct((B, H * W, cout_p), jnp.bfloat16),
        grid_spec=pltpu.PrefetchScalarGridSpec(
            num_scalar_prefetch=0,
            grid=(B, nH),                                   # >= 4 steps total
            in_specs=[
                # whole padded image: fetched once per b, resident across H-tiles
                pl.BlockSpec((1, H + 4, W + 2, cin_p), lambda b, t: (b, 0, 0, 0)),
                pl.BlockSpec((9 * cin_p, cout_p), lambda b, t: (0, 0)),      # w1
                pl.BlockSpec((9 * cin_p, cout_p), lambda b, t: (0, 0)),      # ws
                pl.BlockSpec((1, cout_p), lambda b, t: (0, 0)),              # b1
                pl.BlockSpec((3, 3 * cout_p, cout_p), lambda b, t: (0, 0, 0)),  # w2
                pl.BlockSpec((1, cout_p), lambda b, t: (0, 0)),              # b2+bs
            ],
            out_specs=pl.BlockSpec((1, TH * W, cout_p), lambda b, t: (b, t, 0)),
        ),
        compiler_params=pltpu.CompilerParams(
            dimension_semantics=("parallel", "parallel"),
        ),
    )(xp, w1, ws, b1p, w2, b2sp)

    out = out.reshape(B, H, W, cout_p)[..., :Cout].astype(jnp.float32)
    return jnp.transpose(out, (0, 3, 1, 2))                     # -> NCHW


# --------------------------------- Reference -------------------------------- #

def _reference_forward(x_nchw, params, eps=1e-5):
    dn = ("NCHW", "OIHW", "NCHW")

    def conv(x, w, pad):
        return jax.lax.conv_general_dilated(x, w, (1, 1), [(pad, pad)] * 2,
                                            dimension_numbers=dn)

    def bn(x, p):
        s = p["gamma"] * jax.lax.rsqrt(p["var"] + eps)
        b = p["beta"] - p["mean"] * s
        return x * s[None, :, None, None] + b[None, :, None, None]

    block = bn(conv(x_nchw, params["conv1_w"], 1), params["bn1"])
    block = jnp.maximum(block, 0.0)
    block = bn(conv(block, params["conv2_w"], 1), params["bn2"])
    short = bn(conv(x_nchw, params["convs_w"], 0), params["bns"])
    return jnp.maximum(short + block, 0.0)


# ----------------------------------- Main ----------------------------------- #

def _make_bn(key, c):
    k1, k2, k3, k4 = jax.random.split(key, 4)
    return {
        "gamma": 1.0 + 0.1 * jax.random.normal(k1, (c,), jnp.float32),
        "beta": 0.1 * jax.random.normal(k2, (c,), jnp.float32),
        "mean": 0.1 * jax.random.normal(k3, (c,), jnp.float32),
        "var": jax.random.uniform(k4, (c,), jnp.float32, 0.5, 1.5),
    }


if __name__ == "__main__":
    Cin, Cout = 4, 8
    B, H, W = 2, 16, 16

    key = jax.random.PRNGKey(0)
    kx, k1, k2, k3, kb1, kb2, kb3 = jax.random.split(key, 7)

    params = {
        "conv1_w": 0.1 * jax.random.normal(k1, (Cout, Cin, 3, 3), jnp.float32),
        "bn1": _make_bn(kb1, Cout),
        "conv2_w": 0.1 * jax.random.normal(k2, (Cout, Cout, 3, 3), jnp.float32),
        "bn2": _make_bn(kb2, Cout),
        "convs_w": 0.1 * jax.random.normal(k3, (Cout, Cin, 1, 1), jnp.float32),
        "bns": _make_bn(kb3, Cout),
    }

    x = jax.random.normal(kx, (B, Cin, H, W), jnp.float32)   # NCHW, like PyTorch

    out = jax.jit(resnet_block_forward)(x, params)
    out = jax.block_until_ready(out)

    ref = _reference_forward(x, params)
    assert out.shape == (B, Cout, H, W), out.shape
    max_err = float(jnp.max(jnp.abs(out - ref)))
    # bf16 matmul operands + bf16 intermediate/output vs an f32 reference.
    assert jnp.allclose(out, ref, rtol=3e-2, atol=3e-2), max_err

    print("KERNEL_OK")
</pallas_src>

<mosaic_0001>
module attributes {stable_mosaic.version = 11 : i64} {
  func.func @_resnet_block_kernel(%arg0: i32, %arg1: i32, %arg2: memref<1x20x18x16xbf16, #tpu.memory_space<vmem>>, %arg3: memref<144x128xbf16, #tpu.memory_space<vmem>>, %arg4: memref<144x128xbf16, #tpu.memory_space<vmem>>, %arg5: memref<1x128xf32, #tpu.memory_space<vmem>>, %arg6: memref<3x384x128xbf16, #tpu.memory_space<vmem>>, %arg7: memref<1x128xf32, #tpu.memory_space<vmem>>, %arg8: memref<1x128x128xbf16, #tpu.memory_space<vmem>>) attributes {dimension_semantics = [#tpu.dimension_semantics<parallel>, #tpu.dimension_semantics<parallel>], iteration_bounds = array<i64: 2, 2>, scalar_prefetch = 0 : i64, scratch_operands = 0 : i64, tpu.core_type = #tpu.core_type<tc>, window_params = [{transform_indices = @transform_0, window_bounds = array<i64: 1, 20, 18, 16>}, {pipeline_mode = #tpu.pipeline_mode<synchronous>, transform_indices = @transform_1, window_bounds = array<i64: 144, 128>}, {pipeline_mode = #tpu.pipeline_mode<synchronous>, transform_indices = @transform_2, window_bounds = array<i64: 144, 128>}, {pipeline_mode = #tpu.pipeline_mode<synchronous>, transform_indices = @transform_3, window_bounds = array<i64: 1, 128>}, {pipeline_mode = #tpu.pipeline_mode<synchronous>, transform_indices = @transform_4, window_bounds = array<i64: 3, 384, 128>}, {pipeline_mode = #tpu.pipeline_mode<synchronous>, transform_indices = @transform_5, window_bounds = array<i64: 1, 128>}, {transform_indices = @transform_6, window_bounds = array<i64: 1, 128, 128>}]} {
    %c8_i32 = arith.constant 8 : i32
    %0 = arith.muli %arg1, %c8_i32 : i32
    %1 = tpu.assume_multiple %0, 8 : i32
    %c0 = arith.constant 0 : index
    %2 = arith.index_cast %1 : i32 to index
    %c0_0 = arith.constant 0 : index
    %c0_1 = arith.constant 0 : index
    %3 = vector.load %arg2[%c0, %2, %c0_0, %c0_1] : memref<1x20x18x16xbf16, #tpu.memory_space<vmem>>, vector<1x12x18x16xbf16>
    %4 = vector.shape_cast %3 : vector<1x12x18x16xbf16> to vector<12x18x16xbf16>
    %5 = vector.extract_strided_slice %4 {offsets = [0, 0, 0], sizes = [10, 18, 16], strides = [1, 1, 1]} : vector<12x18x16xbf16> to vector<10x18x16xbf16>
    %6 = vector.extract_strided_slice %4 {offsets = [1, 0, 0], sizes = [10, 18, 16], strides = [1, 1, 1]} : vector<12x18x16xbf16> to vector<10x18x16xbf16>
    %7 = vector.extract_strided_slice %4 {offsets = [2, 0, 0], sizes = [10, 18, 16], strides = [1, 1, 1]} : vector<12x18x16xbf16> to vector<10x18x16xbf16>
    %8 = tpu.concatenate %5, %6, %7 in 2 : vector<10x18x16xbf16>, vector<10x18x16xbf16>, vector<10x18x16xbf16> -> vector<10x18x48xbf16>
    %9 = vector.extract_strided_slice %8 {offsets = [0, 0, 0], sizes = [10, 16, 48], strides = [1, 1, 1]} : vector<10x18x48xbf16> to vector<10x16x48xbf16>
    %10 = vector.extract_strided_slice %8 {offsets = [0, 1, 0], sizes = [10, 16, 48], strides = [1, 1, 1]} : vector<10x18x48xbf16> to vector<10x16x48xbf16>
    %11 = vector.extract_strided_slice %8 {offsets = [0, 2, 0], sizes = [10, 16, 48], strides = [1, 1, 1]} : vector<10x18x48xbf16> to vector<10x16x48xbf16>
    %12 = tpu.concatenate %9, %10, %11 in 2 : vector<10x16x48xbf16>, vector<10x16x48xbf16>, vector<10x16x48xbf16> -> vector<10x16x144xbf16>
    %13 = vector.shape_cast %12 : vector<10x16x144xbf16> to vector<160x144xbf16>
    %c0_2 = arith.constant 0 : index
    %c0_3 = arith.constant 0 : index
    %14 = vector.load %arg3[%c0_2, %c0_3] : memref<144x128xbf16, #tpu.memory_space<vmem>>, vector<144x128xbf16>
    %cst = arith.constant dense<0.000000e+00> : vector<160x128xf32>
    %15 = tpu.matmul %13, %14, %cst {dimension_numbers = #tpu.dot_dimension_numbers<[1], [0], [0], [1], [0, 0, 1, 1], [], []>} : vector<160x144xbf16>, vector<144x128xbf16>, vector<160x128xf32> -> vector<160x128xf32>
    %c0_4 = arith.constant 0 : index
    %c0_5 = arith.constant 0 : index
    %16 = vector.load %arg5[%c0_4, %c0_5] : memref<1x128xf32, #tpu.memory_space<vmem>>, vector<1x128xf32>
    %17 = vector.broadcast %16 : vector<1x128xf32> to vector<160x128xf32>
    %18 = arith.addf %15, %17 : vector<160x128xf32>
    %cst_6 = arith.constant 0.000000e+00 : f32
    %19 = vector.broadcast %cst_6 : f32 to vector<160x128xf32>
    %20 = arith.maximumf %18, %19 : vector<160x128xf32>
    %21 = vector.shape_cast %20 : vector<160x128xf32> to vector<10x16x128xf32>
    %22 = tpu.iota {dimensions = array<i32: 0>} : vector<10x1x1xi32>
    %c8_i32_7 = arith.constant 8 : i32
    %23 = arith.muli %arg1, %c8_i32_7 : i32
    %c1_i32 = arith.constant 1 : i32
    %24 = arith.subi %23, %c1_i32 : i32
    %25 = vector.broadcast %24 : i32 to vector<10x1x1xi32>
    %26 = arith.addi %22, %25 : vector<10x1x1xi32>
    %c0_i32 = arith.constant 0 : i32
    %27 = vector.broadcast %c0_i32 : i32 to vector<10x1x1xi32>
    %28 = arith.cmpi sge, %26, %27 : vector<10x1x1xi32>
    %c16_i32 = arith.constant 16 : i32
    %29 = vector.broadcast %c16_i32 : i32 to vector<10x1x1xi32>
    %30 = arith.cmpi slt, %26, %29 : vector<10x1x1xi32>
    %31 = arith.andi %28, %30 : vector<10x1x1xi1>
    %cst_8 = arith.constant 0.000000e+00 : f32
    %32 = vector.shape_cast %31 : vector<10x1x1xi1> to vector<10x1x1xi1>
    %33 = vector.broadcast %32 : vector<10x1x1xi1> to vector<10x16x128xi1>
    %34 = vector.broadcast %cst_8 : f32 to vector<10x16x128xf32>
    %35 = arith.select %33, %21, %34 : vector<10x16x128xi1>, vector<10x16x128xf32>
    %36 = arith.truncf %35 : vector<10x16x128xf32> to vector<10x16x128xbf16>
    %37 = vector.extract_strided_slice %13 {offsets = [16, 0], sizes = [128, 144], strides = [1, 1]} : vector<160x144xbf16> to vector<128x144xbf16>
    %c0_9 = arith.constant 0 : index
    %c0_10 = arith.constant 0 : index
    %38 = vector.load %arg4[%c0_9, %c0_10] : memref<144x128xbf16, #tpu.memory_space<vmem>>, vector<144x128xbf16>
    %cst_11 = arith.constant dense<0.000000e+00> : vector<128x128xf32>
    %39 = tpu.matmul %37, %38, %cst_11 {dimension_numbers = #tpu.dot_dimension_numbers<[1], [0], [0], [1], [0, 0, 1, 1], [], []>} : vector<128x144xbf16>, vector<144x128xbf16>, vector<128x128xf32> -> vector<128x128xf32>
    %c0_12 = arith.constant 0 : index
    %c0_13 = arith.constant 0 : index
    %40 = vector.load %arg7[%c0_12, %c0_13] : memref<1x128xf32, #tpu.memory_space<vmem>>, vector<1x128xf32>
    %41 = vector.broadcast %40 : vector<1x128xf32> to vector<128x128xf32>
    %42 = arith.addf %39, %41 : vector<128x128xf32>
    %cst_14 = arith.constant 0.000000e+00 : bf16
    %43 = vector.broadcast %cst_14 : bf16 to vector<10x1x128xbf16>
    %44 = vector.extract_strided_slice %36 {offsets = [0, 0, 0], sizes = [10, 15, 128], strides = [1, 1, 1]} : vector<10x16x128xbf16> to vector<10x15x128xbf16>
    %45 = tpu.concatenate %43, %44 in 1 : vector<10x1x128xbf16>, vector<10x15x128xbf16> -> vector<10x16x128xbf16>
    %46 = vector.extract_strided_slice %36 {offsets = [0, 1, 0], sizes = [10, 15, 128], strides = [1, 1, 1]} : vector<10x16x128xbf16> to vector<10x15x128xbf16>
    %47 = tpu.concatenate %46, %43 in 1 : vector<10x15x128xbf16>, vector<10x1x128xbf16> -> vector<10x16x128xbf16>
    %48 = vector.extract_strided_slice %45 {offsets = [0, 0, 0], sizes = [8, 16, 128], strides = [1, 1, 1]} : vector<10x16x128xbf16> to vector<8x16x128xbf16>
    %49 = vector.extract_strided_slice %45 {offsets = [1, 0, 0], sizes = [8, 16, 128], strides = [1, 1, 1]} : vector<10x16x128xbf16> to vector<8x16x128xbf16>
    %50 = vector.extract_strided_slice %45 {offsets = [2, 0, 0], sizes = [8, 16, 128], strides = [1, 1, 1]} : vector<10x16x128xbf16> to vector<8x16x128xbf16>
    %51 = tpu.concatenate %48, %49, %50 in 2 : vector<8x16x128xbf16>, vector<8x16x128xbf16>, vector<8x16x128xbf16> -> vector<8x16x384xbf16>
    %52 = vector.shape_cast %51 : vector<8x16x384xbf16> to vector<128x384xbf16>
    %c0_15 = arith.constant 0 : index
    %c0_16 = arith.constant 0 : index
    %c0_17 = arith.constant 0 : index
    %53 = vector.load %arg6[%c0_15, %c0_16, %c0_17] : memref<3x384x128xbf16, #tpu.memory_space<vmem>>, vector<1x384x128xbf16>
    %54 = vector.shape_cast %53 : vector<1x384x128xbf16> to vector<384x128xbf16>
    %cst_18 = arith.constant dense<0.000000e+00> : vector<128x128xf32>
    %55 = tpu.matmul %52, %54, %cst_18 {dimension_numbers = #tpu.dot_dimension_numbers<[1], [0], [0], [1], [0, 0, 1, 1], [], []>} : vector<128x384xbf16>, vector<384x128xbf16>, vector<128x128xf32> -> vector<128x128xf32>
    %56 = arith.addf %42, %55 : vector<128x128xf32>
    %57 = vector.extract_strided_slice %36 {offsets = [0, 0, 0], sizes = [8, 16, 128], strides = [1, 1, 1]} : vector<10x16x128xbf16> to vector<8x16x128xbf16>
    %58 = vector.extract_strided_slice %36 {offsets = [1, 0, 0], sizes = [8, 16, 128], strides = [1, 1, 1]} : vector<10x16x128xbf16> to vector<8x16x128xbf16>
    %59 = vector.extract_strided_slice %36 {offsets = [2, 0, 0], sizes = [8, 16, 128], strides = [1, 1, 1]} : vector<10x16x128xbf16> to vector<8x16x128xbf16>
    %60 = tpu.concatenate %57, %58, %59 in 2 : vector<8x16x128xbf16>, vector<8x16x128xbf16>, vector<8x16x128xbf16> -> vector<8x16x384xbf16>
    %61 = vector.shape_cast %60 : vector<8x16x384xbf16> to vector<128x384xbf16>
    %c1 = arith.constant 1 : index
    %c0_19 = arith.constant 0 : index
    %c0_20 = arith.constant 0 : index
    %62 = vector.load %arg6[%c1, %c0_19, %c0_20] : memref<3x384x128xbf16, #tpu.memory_space<vmem>>, vector<1x384x128xbf16>
    %63 = vector.shape_cast %62 : vector<1x384x128xbf16> to vector<384x128xbf16>
    %cst_21 = arith.constant dense<0.000000e+00> : vector<128x128xf32>
    %64 = tpu.matmul %61, %63, %cst_21 {dimension_numbers = #tpu.dot_dimension_numbers<[1], [0], [0], [1], [0, 0, 1, 1], [], []>} : vector<128x384xbf16>, vector<384x128xbf16>, vector<128x128xf32> -> vector<128x128xf32>
    %65 = arith.addf %56, %64 : vector<128x128xf32>
    %66 = vector.extract_strided_slice %47 {offsets = [0, 0, 0], sizes = [8, 16, 128], strides = [1, 1, 1]} : vector<10x16x128xbf16> to vector<8x16x128xbf16>
    %67 = vector.extract_strided_slice %47 {offsets = [1, 0, 0], sizes = [8, 16, 128], strides = [1, 1, 1]} : vector<10x16x128xbf16> to vector<8x16x128xbf16>
    %68 = vector.extract_strided_slice %47 {offsets = [2, 0, 0], sizes = [8, 16, 128], strides = [1, 1, 1]} : vector<10x16x128xbf16> to vector<8x16x128xbf16>
    %69 = tpu.concatenate %66, %67, %68 in 2 : vector<8x16x128xbf16>, vector<8x16x128xbf16>, vector<8x16x128xbf16> -> vector<8x16x384xbf16>
    %70 = vector.shape_cast %69 : vector<8x16x384xbf16> to vector<128x384xbf16>
    %c2 = arith.constant 2 : index
    %c0_22 = arith.constant 0 : index
    %c0_23 = arith.constant 0 : index
    %71 = vector.load %arg6[%c2, %c0_22, %c0_23] : memref<3x384x128xbf16, #tpu.memory_space<vmem>>, vector<1x384x128xbf16>
    %72 = vector.shape_cast %71 : vector<1x384x128xbf16> to vector<384x128xbf16>
    %cst_24 = arith.constant dense<0.000000e+00> : vector<128x128xf32>
    %73 = tpu.matmul %70, %72, %cst_24 {dimension_numbers = #tpu.dot_dimension_numbers<[1], [0], [0], [1], [0, 0, 1, 1], [], []>} : vector<128x384xbf16>, vector<384x128xbf16>, vector<128x128xf32> -> vector<128x128xf32>
    %74 = arith.addf %65, %73 : vector<128x128xf32>
    %cst_25 = arith.constant 0.000000e+00 : f32
    %75 = vector.broadcast %cst_25 : f32 to vector<128x128xf32>
    %76 = arith.maximumf %74, %75 : vector<128x128xf32>
    %77 = arith.truncf %76 : vector<128x128xf32> to vector<128x128xbf16>
    %c0_26 = arith.constant 0 : index
    %c0_27 = arith.constant 0 : index
    %c0_28 = arith.constant 0 : index
    %78 = vector.load %arg8[%c0_26, %c0_27, %c0_28] : memref<1x128x128xbf16, #tpu.memory_space<vmem>>, vector<1x128x128xbf16>
    %79 = vector.shape_cast %78 : vector<1x128x128xbf16> to vector<128x128xbf16>
    %80 = vector.shape_cast %77 : vector<128x128xbf16> to vector<1x128x128xbf16>
    tpu.vector_store %arg8[%c0_26, %c0_27, %c0_28], %80 {strides = array<i32>} : memref<1x128x128xbf16, #tpu.memory_space<vmem>>, vector<1x128x128xbf16>,
    return
  }
  func.func @transform_0(%arg0: i32, %arg1: i32) -> (i32, i32, i32, i32) {
    %c0_i32 = arith.constant 0 : i32
    %c0_i32_0 = arith.constant 0 : i32
    %c0_i32_1 = arith.constant 0 : i32
    %c0_i32_2 = arith.constant 0 : i32
    return %arg0, %c0_i32, %c0_i32_0, %c0_i32_1 : i32, i32, i32, i32
  }
  func.func @transform_1(%arg0: i32, %arg1: i32) -> (i32, i32) {
    %c0_i32 = arith.constant 0 : i32
    %c0_i32_0 = arith.constant 0 : i32
    %c0_i32_1 = arith.constant 0 : i32
    return %c0_i32, %c0_i32_0 : i32, i32
  }
  func.func @transform_2(%arg0: i32, %arg1: i32) -> (i32, i32) {
    %c0_i32 = arith.constant 0 : i32
    %c0_i32_0 = arith.constant 0 : i32
    %c0_i32_1 = arith.constant 0 : i32
    return %c0_i32, %c0_i32_0 : i32, i32
  }
  func.func @transform_3(%arg0: i32, %arg1: i32) -> (i32, i32) {
    %c0_i32 = arith.constant 0 : i32
    %c0_i32_0 = arith.constant 0 : i32
    %c0_i32_1 = arith.constant 0 : i32
    return %c0_i32, %c0_i32_0 : i32, i32
  }
  func.func @transform_4(%arg0: i32, %arg1: i32) -> (i32, i32, i32) {
    %c0_i32 = arith.constant 0 : i32
    %c0_i32_0 = arith.constant 0 : i32
    %c0_i32_1 = arith.constant 0 : i32
    %c0_i32_2 = arith.constant 0 : i32
    return %c0_i32, %c0_i32_0, %c0_i32_1 : i32, i32, i32
  }
  func.func @transform_5(%arg0: i32, %arg1: i32) -> (i32, i32) {
    %c0_i32 = arith.constant 0 : i32
    %c0_i32_0 = arith.constant 0 : i32
    %c0_i32_1 = arith.constant 0 : i32
    return %c0_i32, %c0_i32_0 : i32, i32
  }
  func.func @transform_6(%arg0: i32, %arg1: i32) -> (i32, i32, i32) {
    %c0_i32 = arith.constant 0 : i32
    %c0_i32_0 = arith.constant 0 : i32
    return %arg0, %arg1, %c0_i32 : i32, i32, i32
  }
}

</mosaic_0001>

<bundles_post_ra>
// kernel: resnet_block_forward.1
= control target key start
LH: loop header
LB: loop body
LE: loop exit
PB: predicated region body
PF: predicated region fallthrough
CT: control target
= control target key end

     0   :  { %s3835_s21 = smov 0   ;;  %s3837_s22 = smov 0   ;;  %s5141_s0 = inlined_call_operand.vmem [shape: bf16[2,20,18,16], index: 0, kind: input, shape index: {}]   ;;  %s5142_s1 = inlined_call_operand.vmem [shape: bf16[144,128], index: 1, kind: input, shape index: {}]   ;;  %s5143_s2 = inlined_call_operand.vmem [shape: bf16[144,128], index: 2, kind: input, shape index: {}]   ;;  %s5144_s3 = inlined_call_operand.vmem [shape: f32[1,128], index: 3, kind: input, shape index: {}]   ;;  %s5145_s4 = inlined_call_operand.vmem [shape: bf16[3,384,128], index: 4, kind: input, shape index: {}]   ;;  %s5146_s5 = inlined_call_operand.vmem [shape: f32[1,128], index: 5, kind: input, shape index: {}]   ;;  %s5147_s6 = inlined_call_operand.vmem [shape: bf16[2,256,128], index: 6, kind: output, shape index: {}]  }
   0x1   :  { %s3839_s23 = smov 0   ;;  %s3841_s24 = smov 0  }
   0x2   :  { %s3843_s25 = smov 0  }
   0x3 LB: > { %s25_s26 = sadd.s32 1, %s3785_s23  ;;  %s28_s27 = sadd.s32 1, %s3789_s24  ;;  %s3793_s25 = sphi %s3843_s25, %s16_s25   ;;  %s3789_s24 = sphi %s3841_s24, %s5190_s24   ;;  %s3785_s23 = sphi %s3839_s23, %s5189_s23   ;;  %s3781_s22 = sphi %s3837_s22, %s5188_s22   ;;  %s3777_s21 = sphi %s3835_s21, %s5187_s21  }
   0x4   : > { %p26_p0 = scmp.ge.s32.totalorder %s25_s26, 2  ;;  %p2866_p1 = scmp.ge.s32.totalorder %s3793_s25, 1 }
   0x5   : > { %p226_p2 = scmp.lt.s32.totalorder %s3793_s25, 5 }
   0x6   : > { %s5192_s26 = smov (%p26_p0, %s25_s26), 0  ;;  %s5194_s27 = smov (!%p26_p0, %s28_s27), %s3789_s24 }
   0x7   : > { %p227_p3 = pnand %p2866_p1, %p226_p2  ;;  %p30_p4 = scmp.ge.s32.totalorder %s5194_s27, 2 }
   0x8   : > { %p260_p5 = scmp.lt.s32.totalorder (!%p227_p3), %s3781_s22, 1  ;;  %s3195_s28 = smul.u32 (!%p227_p3), 96, %s3777_s21  ;;  %v3665_v19 = vld [vmem:[%s5142_s1] sm:$0xff] (!%p227_p3)   ;;  %v3797_v20 = vmov (!%p227_p3), 0   ;;  %v3666_v23 = vld [vmem:[%s5142_s1 + $0x8] sm:$0xff] (!%p227_p3)   ;;  %v3667_v26 = vld [vmem:[%s5142_s1 + $0x10] sm:$0xff] (!%p227_p3)  }
   0x9   : > { %s5196_s27 = smov (%p30_p4, %s5194_s27), 0  ;;  %230 = sbr.rel (%p227_p3) target bundleno = 940 (0x3ac), region = 44 }
   0xa   : > { %s3795_s10 = smov (!%p227_p3), 16   ;;  %s3796_s11 = smov (!%p227_p3), 32   ;;  %937 = vmatprep.subr.bf16.mxu0 (!%p227_p3), %v3797_v20  ;;  %1240 = vmatprep.subr.bf16.mxu1 (!%p227_p3), %v3797_v20  ;;  %v3668_v21 = vld [vmem:[%s5143_s2] sm:$0xff] (!%p227_p3)   ;;  %v3670_v24 = vld [vmem:[%s5143_s2 + $0x8] sm:$0xff] (!%p227_p3)   ;;  %v3672_v27 = vld [vmem:[%s5143_s2 + $0x10] sm:$0xff] (!%p227_p3)   ;;  %vm492_vm0 = vcmask (!%p227_p3), 130048  }
   0xb   : > { %938 = vmatpush1.bf16.msra.mxu0 (!%p227_p3), %v3665_v19  ;;  %1241 = vmatpush1.bf16.msra.mxu1 (!%p227_p3), %v3668_v21  ;;  %v3669_v28 = vld [vmem:[%s5142_s1 + $0x18] sm:$0xff] (!%p227_p3)   ;;  %v3671_v30 = vld [vmem:[%s5142_s1 + $0x20] sm:$0xff] (!%p227_p3)   ;;  %v3673_v32 = vld [vmem:[%s5142_s1 + $0x28] sm:$0xff] (!%p227_p3)   ;;  %vm553_vm1 = vcmask (!%p227_p3), 261120   ;;  %vm735_vm2 = vcmask (!%p227_p3), 1046528   ;;  %s3798_s20 = smov (!%p227_p3), 96  }
   0xc   : > { %939 = vmatprep.subr.bf16.mxu0 (!%p227_p3), %v3797_v20  ;;  %1242 = vmatprep.subr.bf16.mxu1 (!%p227_p3), %v3797_v20  ;;  %v3674_v29 = vld [vmem:[%s5143_s2 + $0x18] sm:$0xff] (!%p227_p3)   ;;  %v3676_v31 = vld [vmem:[%s5143_s2 + $0x20] sm:$0xff] (!%p227_p3)   ;;  %v3678_v33 = vld [vmem:[%s5143_s2 + $0x28] sm:$0xff] (!%p227_p3)   ;;  %vm594_vm3 = vsmask.f32 (!%p227_p3), 7424  ;;  %vm786_vm4 = vcmask (!%p227_p3), 392192  }
   0xd   : > { %v3675_v34 = vld [vmem:[%s5142_s1 + $0x30] sm:$0xff] (!%p227_p3)   ;;  %v3677_v35 = vld [vmem:[%s5142_s1 + $0x38] sm:$0xff] (!%p227_p3)   ;;  %v3679_v36 = vld [vmem:[%s5142_s1 + $0x40] sm:$0xff] (!%p227_p3)   ;;  %vm807_vm5 = vcmask (!%p227_p3), 785408   ;;  %vm1417_vm14 = vcmask (!%p227_p3), 1040384   ;;  %s2868_s19 = sshll.u32 (!%p227_p3), %s3777_s21, 4 }
   0xe   : > { %v3680_v37 = vld [vmem:[%s5143_s2 + $0x30] sm:$0xff] (!%p227_p3)   ;;  %v3681_v43 = vld [vmem:[%s5143_s2 + $0x38] sm:$0xff] (!%p227_p3)   ;;  %v3682_v52 = vld [vmem:[%s5143_s2 + $0x40] sm:$0xff] (!%p227_p3)   ;;  %vm1418_vm15 = vsmask.f32 (!%p227_p3), 256  ;;  %p268_p6 = scmp.lt.s32.totalorder (!%p227_p3), %s2868_s19, 31 }
   0xf   : > { %940 = vmatpush1.bf16.msra.mxu0 (!%p227_p3), %v3666_v23  ;;  %1243 = vmatpush1.bf16.msra.mxu1 (!%p227_p3), %v3670_v24 }
  0x10   : > { %s5198_s22 = smov (!%p260_p5, %s3781_s22), 1  ;;  %941 = vmatprep.subr.bf16.mxu0 %v3797_v20  ;;  %1244 = vmatprep.subr.bf16.mxu1 %v3797_v20  ;;  %s5200_s19 = smov (!%p268_p6, %s2868_s19), 31 }
  0x11   : > { %s3595_s29 = smul.u32 240, %s5198_s22 }
  0x13   : > { %s264_s8 = scalar_lea.vmem %s5141_s0, %s3595_s29  ;;  %942 = vmatpush1.bf16.msra.mxu0 %v3667_v26  ;;  %1245 = vmatpush1.bf16.msra.mxu1 %v3672_v27 }
  0x14   : > { %s3874_s9 = scalar_lea.vmem %s264_s8, %s3195_s28  ;;  %943 = vmatprep.subr.bf16.mxu0 %v3797_v20  ;;  %1246 = vmatprep.subr.bf16.mxu1 %v3797_v20  ;;  %s3799_s28 = smov 48  }
  0x15   : > { %v3877_v0 = vld [vmem:[%s3874_s9 + $0x14] ss:$0 sps:$4 sm:$0x11]   ;;  %v3880_v1 = vld [vmem:[%s3874_s9 + $0xc] sm:$0xff]   ;;  %v3890_v3 = vld [vmem:[%s3874_s9 + $0x18] sm:$0xff]  }
  0x16   : > { %406 = vrot.lane.b32.xlu1 %v3877_v0, %s3795_s10  ;;  %404 = vrot.lane.b32.xlu0 %v3880_v1, %s3795_s10  ;;  %v3887_v2 = vld [vmem:[%s3874_s9 + $0x20] ss:$0 sps:$4 sm:$0x11]   ;;  %v3893_v4 = vld [vmem:[%s3874_s9 + $0x24] sm:$0xff]  }
  0x17   : > { %v3904_v5 = vld [vmem:[%s3874_s9 + $0x2c] ss:$0 sps:$4 sm:$0x11]   ;;  %v3911_v6 = vld [vmem:[%s3874_s9 + $0x30] sm:$0xff]   ;;  %v3921_v8 = vld [vmem:[%s3874_s9 + $0x3c] sm:$0xff]   ;;  %944 = vmatpush1.bf16.msra.mxu0 %v3669_v28  ;;  %1247 = vmatpush1.bf16.msra.mxu1 %v3674_v29 }
  0x18   : > { %v3918_v7 = vld [vmem:[%s3874_s9 + $0x38] ss:$0 sps:$4 sm:$0x11]   ;;  %v3928_v9 = vld [vmem:[%s3874_s9 + $0x44] ss:$0 sps:$4 sm:$0x11]   ;;  %945 = vmatprep.subr.bf16.mxu0 %v3797_v20  ;;  %1248 = vmatprep.subr.bf16.mxu1 %v3797_v20 }
  0x19   : > { %v3935_v10 = vld [vmem:[%s3874_s9 + $0x48] sm:$0xff]   ;;  %v3942_v11 = vld [vmem:[%s3874_s9 + $0x50] ss:$0 sps:$4 sm:$0x11]   ;;  %v3949_v12 = vld [vmem:[%s3874_s9 + $0x54] sm:$0xff]  }
  0x1a   : > { %454 = vrot.lane.b32.xlu1 %v3887_v2, %s3796_s11  ;;  %452 = vrot.lane.b32.xlu0 %v3890_v3, %s3796_s11  ;;  %v3956_v13 = vld [vmem:[%s3874_s9 + $0x5c] ss:$0 sps:$4 sm:$0x11]   ;;  %v3963_v14 = vld [vmem:[%s3874_s9 + $0x60] sm:$0xff]  }
  0x1b   : > { %v3970_v15 = vld [vmem:[%s3874_s9 + $0x68] ss:$0 sps:$4 sm:$0x11]   ;;  %v3977_v16 = vld [vmem:[%s3874_s9 + $0x6c] sm:$0xff]   ;;  %v3659_v18 = vld [vmem:[%s3874_s9 + $0x78] sm:$0xff]   ;;  %946 = vmatpush1.bf16.msra.mxu0 %v3671_v30  ;;  %1249 = vmatpush1.bf16.msra.mxu1 %v3676_v31 }
  0x1c   : > { %v3984_v17 = vld [vmem:[%s3874_s9 + $0x74] ss:$0 sps:$4 sm:$0x11]   ;;  %v4007_v22 = vld [vmem:[%s3874_s9 + $0x80] ss:$0 sps:$4 sm:$0x11]   ;;  %947 = vmatprep.subr.bf16.mxu0 %v3797_v20  ;;  %1250 = vmatprep.subr.bf16.mxu1 %v3797_v20 }
  0x1d   : > { %v3663_v25 = vld [vmem:[%s3874_s9 + $0x84] sm:$0xff]   ;;  %v3664_v63 = vld [vmem:[%s3874_s9 + $0x8c] ss:$0 sps:$4 sm:$0x11]  }
  0x1e   : > { %408 = vrot.lane.b32.xlu0 %v3890_v3, %s3795_s10  ;;  %456 = vrot.lane.b32.xlu1 %v3893_v4, %s3796_s11  ;;  %v3661_v38 = vld [vmem:[%s3874_s9 + $0x8] ss:$0 sps:$4 sm:$0x11]   ;;  %v3662_v41 = vld [vmem:[%s3874_s9] sm:$0xff]  }
  0x1f   : > { %948 = vmatpush1.bf16.msra.mxu0 %v3673_v32  ;;  %1251 = vmatpush1.bf16.msra.mxu1 %v3678_v33 }
  0x20   : > { %949 = vmatprep.subr.bf16.mxu0 %v3797_v20  ;;  %1252 = vmatprep.subr.bf16.mxu1 %v3797_v20 }
  0x22   : > { %410 = vrot.lane.b32.xlu0 %v3887_v2, %s3795_s10  ;;  %458 = vrot.lane.b32.xlu1 %v3904_v5, %s3796_s11 }
  0x23   : > { %950 = vmatpush1.bf16.msra.mxu0 %v3675_v34  ;;  %1253 = vmatpush1.bf16.msra.mxu1 %v3680_v37 }
  0x24   : > { %951 = vmatprep.subr.bf16.mxu0 %v3797_v20  ;;  %1254 = vmatprep.subr.bf16.mxu1 %v3797_v20 }
  0x26   : > { %412 = vrot.lane.b32.xlu0 %v3893_v4, %s3795_s10  ;;  %460 = vrot.lane.b32.xlu1 %v3911_v6, %s3796_s11 }
  0x27   : > { %952 = vmatpush1.bf16.msra.mxu0 %v3677_v35  ;;  %1255 = vmatpush1.bf16.msra.mxu1 %v3681_v43 }
  0x28   : > { %953 = vmatprep.subr.bf16.mxu0 %v3797_v20  ;;  %1256 = vmatprep.subr.bf16.mxu1 %v3797_v20 }
  0x2a   : > { %414 = vrot.lane.b32.xlu0 %v3904_v5, %s3795_s10  ;;  %462 = vrot.lane.b32.xlu1 %v3918_v7, %s3796_s11 }
  0x2b   : > { %954 = vmatpush1.bf16.msra.mxu0 %v3679_v36  ;;  %1257 = vmatpush1.bf16.msra.mxu1 %v3682_v52 }
  0x2e   : > { %416 = vrot.lane.b32.xlu0 %v3911_v6, %s3795_s10  ;;  %464 = vrot.lane.b32.xlu1 %v3921_v8, %s3796_s11 }
  0x32   : > { %418 = vrot.lane.b32.xlu0 %v3918_v7, %s3795_s10  ;;  %466 = vrot.lane.b32.xlu1 %v3928_v9, %s3796_s11 }
  0x36   : > { %420 = vrot.lane.b32.xlu0 %v3921_v8, %s3795_s10  ;;  %468 = vrot.lane.b32.xlu1 %v3935_v10, %s3796_s11 }
  0x3a   : > { %422 = vrot.lane.b32.xlu0 %v3928_v9, %s3795_s10  ;;  %470 = vrot.lane.b32.xlu1 %v3942_v11, %s3796_s11 }
  0x3e   : > { %424 = vrot.lane.b32.xlu0 %v3935_v10, %s3795_s10  ;;  %472 = vrot.lane.b32.xlu1 %v3949_v12, %s3796_s11 }
  0x42   : > { %426 = vrot.lane.b32.xlu0 %v3942_v11, %s3795_s10  ;;  %474 = vrot.lane.b32.xlu1 %v3956_v13, %s3796_s11 }
  0x46   : > { %428 = vrot.lane.b32.xlu0 %v3949_v12, %s3795_s10  ;;  %476 = vrot.lane.b32.xlu1 %v3963_v14, %s3796_s11 }
  0x4a   : > { %430 = vrot.lane.b32.xlu0 %v3956_v13, %s3795_s10  ;;  %478 = vrot.lane.b32.xlu1 %v3970_v15, %s3796_s11 }
  0x4e   : > { %432 = vrot.lane.b32.xlu0 %v3963_v14, %s3795_s10  ;;  %480 = vrot.lane.b32.xlu1 %v3977_v16, %s3796_s11 }
  0x52   : > { %434 = vrot.lane.b32.xlu0 %v3970_v15, %s3795_s10  ;;  %482 = vrot.lane.b32.xlu1 %v3984_v17, %s3796_s11 }
  0x56   : > { %436 = vrot.lane.b32.xlu0 %v3977_v16, %s3795_s10  ;;  %484 = vrot.lane.b32.xlu1 %v3659_v18, %s3796_s11 }
  0x5a   : > { %438 = vrot.lane.b32.xlu0 %v3984_v17, %s3795_s10  ;;  %486 = vrot.lane.b32.xlu1 %v4007_v22, %s3796_s11 }
  0x5e   : > { %488 = vrot.lane.b32.xlu1 %v3663_v25, %s3796_s11  ;;  %440 = vrot.lane.b32.xlu0 %v3659_v18, %s3795_s10 }
  0x88   : > { %v407_v39 = vpop.permute.xlu1 %406  ;;  %v405_v40 = vpop.permute.xlu0 %404 }
  0x89   : > { %v498_v42 = vsel %vm492_vm0, %v3661_v38, %v407_v39  ;;  %v495_v44 = vsel %vm492_vm0, %v3662_v41, %v405_v40 }
  0x8c   : > { %v455_v45 = vpop.permute.xlu1 %454  ;;  %v453_v46 = vpop.permute.xlu0 %452 }
  0x8d   : > { %v557_v47 = vsel %vm553_vm1, %v498_v42, %v455_v45  ;;  %v4082_v48 = vsel %vm553_vm1, %v495_v44, %v453_v46 }
  0x8e   : > { %v601_v49 = vshll.u32 %v557_v47, 16  ;;  %v737_v50 = vrot.slane %v557_v47, 1  ;;  %v597_v51 = vshll.u32 %v4082_v48, 16  ;;  %v736_v53 = vrot.slane %v4082_v48, 1 }
  0x8f   : > { %v595_v54 = vshrl.u32 %v4082_v48, 16 }
  0x90   : > { %v599_v55 = vrot.slane %v597_v51, 1  ;;  %v409_v56 = vpop.permute.xlu0 %408  ;;  %v457_v57 = vpop.permute.xlu1 %456  ;;  %v738_v59 = vsel %vm735_vm2, %v736_v53, %v737_v50  ;;  %v603_v60 = vrot.slane %v601_v49, 1 }
  0x91   : > { %v501_v58 = vsel %vm492_vm0, %v3880_v1, %v409_v56  ;;  %766 = vrot.lane.b32.xlu1 %v738_v59, %s3798_s20 }
  0x92   : > { %v4095_v61 = vsel %vm553_vm1, %v501_v58, %v457_v57  ;;  %v600_v62 = vor.u32 %v599_v55, %v595_v54 }
  0x93   : > { %v605_v18 = vshrl.u32 %v4095_v61, 16  ;;  %v607_v19 = vshll.u32 %v4095_v61, 16  ;;  %v739_v24 = vrot.slane %v4095_v61, 1 }
  0x94   : > { %v411_v20 = vpop.permute.xlu0 %410  ;;  %v459_v21 = vpop.permute.xlu1 %458  ;;  %v604_v1 = vsel %vm594_vm3, %v600_v62, %v603_v60 }
  0x95   : > { %v609_v23 = vrot.slane %v607_v19, 1  ;;  %v504_v25 = vsel %vm492_vm0, %v3877_v0, %v411_v20  ;;  %695 = vrot.lane.b32.xlu0 %v604_v1, %s3799_s28  ;;  %490 = vrot.lane.b32.xlu1 %v3664_v63, %s3796_s11 }
  0x96   : > { %v561_v26 = vsel %vm553_vm1, %v504_v25, %v459_v21 }
  0x97   : > { %v611_v27 = vshll.u32 %v561_v26, 16  ;;  %v740_v28 = vrot.slane %v561_v26, 1  ;;  %v610_v29 = vor.u32 %v609_v23, %v605_v18 }
  0x98   : > { %v413_v30 = vpop.permute.xlu0 %412  ;;  %v461_v31 = vpop.permute.xlu1 %460 }
  0x99   : > { %v613_v32 = vrot.slane %v611_v27, 1  ;;  %v507_v33 = vsel %vm492_vm0, %v3890_v3, %v413_v30  ;;  %442 = vrot.lane.b32.xlu0 %v4007_v22, %s3795_s10  ;;  %v741_v0 = vsel %vm735_vm2, %v739_v24, %v740_v28  ;;  %s2871_s10 = sshll.u32 %s3777_s21, 3 }
  0x9a   : > { %v4114_v34 = vsel %vm553_vm1, %v507_v33, %v461_v31  ;;  %768 = vrot.lane.b32.xlu1 %v741_v0, %s3798_s20  ;;  %s2918_s11 = sadd.s32 4294967295, %s2871_s10 }
  0x9b   : > { %v615_v35 = vshrl.u32 %v4114_v34, 16  ;;  %v617_v36 = vshll.u32 %v4114_v34, 16  ;;  %v614_v37 = vsel %vm594_vm3, %v610_v29, %v613_v32  ;;  %v742_v3 = vrot.slane %v4114_v34, 1 }
  0x9c   : > { %v415_v38 = vpop.permute.xlu0 %414  ;;  %v463_v39 = vpop.permute.xlu1 %462 }
  0x9d   : > { %v619_v40 = vrot.slane %v617_v36, 1  ;;  %v510_v22 = vsel %vm492_vm0, %v3887_v2, %v415_v38  ;;  %697 = vrot.lane.b32.xlu0 %v614_v37, %s3799_s28 }
  0x9e   : > { %v565_v41 = vsel %vm553_vm1, %v510_v22, %v463_v39 }
  0x9f   : > { %v621_v42 = vshll.u32 %v565_v41, 16  ;;  %v743_v43 = vrot.slane %v565_v41, 1  ;;  %v620_v44 = vor.u32 %v619_v40, %v615_v35 }
  0xa0   : > { %v417_v45 = vpop.permute.xlu0 %416  ;;  %v465_v46 = vpop.permute.xlu1 %464 }
  0xa1   : > { %v623_v47 = vrot.slane %v621_v42, 1  ;;  %v513_v49 = vsel %vm492_vm0, %v3893_v4, %v417_v45  ;;  %v744_v50 = vsel %vm735_vm2, %v742_v3, %v743_v43 }
  0xa2   : > { %v4129_v51 = vsel %vm553_vm1, %v513_v49, %v465_v46  ;;  %770 = vrot.lane.b32.xlu1 %v744_v50, %s3798_s20 }
  0xa3   : > { %v625_v2 = vshrl.u32 %v4129_v51, 16  ;;  %v627_v52 = vshll.u32 %v4129_v51, 16  ;;  %v624_v53 = vsel %vm594_vm3, %v620_v44, %v623_v47  ;;  %v745_v4 = vrot.slane %v4129_v51, 1 }
  0xa4   : > { %v419_v54 = vpop.permute.xlu0 %418  ;;  %699 = vrot.lane.b32.xlu0 %v624_v53, %s3799_s28  ;;  %v467_v55 = vpop.permute.xlu1 %466 }
  0xa5   : > { %v629_v56 = vrot.slane %v627_v52, 1  ;;  %v516_v57 = vsel %vm492_vm0, %v3904_v5, %v419_v54 }
  0xa6   : > { %v569_v58 = vsel %vm553_vm1, %v516_v57, %v467_v55 }
  0xa7   : > { %v631_v59 = vshll.u32 %v569_v58, 16  ;;  %v746_v60 = vrot.slane %v569_v58, 1  ;;  %v630_v62 = vor.u32 %v629_v56, %v625_v2 }
  0xa8   : > { %v421_v63 = vpop.permute.xlu0 %420  ;;  %v469_v18 = vpop.permute.xlu1 %468 }
  0xa9   : > { %v633_v19 = vrot.slane %v631_v59, 1  ;;  %v519_v20 = vsel %vm492_vm0, %v3911_v6, %v421_v63  ;;  %v747_v21 = vsel %vm735_vm2, %v745_v4, %v746_v60 }
  0xaa   : > { %v4144_v1 = vsel %vm553_vm1, %v519_v20, %v469_v18  ;;  %772 = vrot.lane.b32.xlu1 %v747_v21, %s3798_s20 }
  0xab   : > { %v635_v5 = vshrl.u32 %v4144_v1, 16  ;;  %v637_v23 = vshll.u32 %v4144_v1, 16  ;;  %v634_v24 = vsel %vm594_vm3, %v630_v62, %v633_v19  ;;  %v748_v6 = vrot.slane %v4144_v1, 1 }
  0xac   : > { %v423_v25 = vpop.permute.xlu0 %422  ;;  %701 = vrot.lane.b32.xlu0 %v634_v24, %s3799_s28  ;;  %v471_v26 = vpop.permute.xlu1 %470 }
  0xad   : > { %v639_v27 = vrot.slane %v637_v23, 1  ;;  %v522_v28 = vsel %vm492_vm0, %v3918_v7, %v423_v25 }
  0xae   : > { %v573_v29 = vsel %vm553_vm1, %v522_v28, %v471_v26 }
  0xaf   : > { %v641_v30 = vshll.u32 %v573_v29, 16  ;;  %v749_v31 = vrot.slane %v573_v29, 1  ;;  %v640_v32 = vor.u32 %v639_v27, %v635_v5 }
  0xb0   : > { %v425_v33 = vpop.permute.xlu0 %424  ;;  %v473_v0 = vpop.permute.xlu1 %472 }
  0xb1   : > { %v643_v35 = vrot.slane %v641_v30, 1  ;;  %v525_v36 = vsel %vm492_vm0, %v3921_v8, %v425_v33  ;;  %v750_v37 = vsel %vm735_vm2, %v748_v6, %v749_v31 }
  0xb2   : > { %v4159_v38 = vsel %vm553_vm1, %v525_v36, %v473_v0  ;;  %774 = vrot.lane.b32.xlu1 %v750_v37, %s3798_s20 }
  0xb3   : > { %v645_v7 = vshrl.u32 %v4159_v38, 16  ;;  %v647_v39 = vshll.u32 %v4159_v38, 16  ;;  %v644_v40 = vsel %vm594_vm3, %v640_v32, %v643_v35  ;;  %v751_v8 = vrot.slane %v4159_v38, 1 }
  0xb4   : > { %v427_v3 = vpop.permute.xlu0 %426  ;;  %703 = vrot.lane.b32.xlu0 %v644_v40, %s3799_s28  ;;  %v475_v22 = vpop.permute.xlu1 %474 }
  0xb5   : > { %v649_v41 = vrot.slane %v647_v39, 1  ;;  %v528_v42 = vsel %vm492_vm0, %v3928_v9, %v427_v3 }
  0xb6   : > { %v577_v43 = vsel %vm553_vm1, %v528_v42, %v475_v22 }
  0xb7   : > { %v651_v44 = vshll.u32 %v577_v43, 16  ;;  %v752_v45 = vrot.slane %v577_v43, 1  ;;  %v650_v46 = vor.u32 %v649_v41, %v645_v7 }
  0xb8   : > { %v429_v47 = vpop.permute.xlu0 %428  ;;  %v477_v49 = vpop.permute.xlu1 %476 }
  0xb9   : > { %v653_v50 = vrot.slane %v651_v44, 1  ;;  %v531_v2 = vsel %vm492_vm0, %v3935_v10, %v429_v47  ;;  %v753_v52 = vsel %vm735_vm2, %v751_v8, %v752_v45 }
  0xba   : > { %v4174_v53 = vsel %vm553_vm1, %v531_v2, %v477_v49  ;;  %776 = vrot.lane.b32.xlu1 %v753_v52, %s3798_s20 }
  0xbb   : > { %v655_v9 = vshrl.u32 %v4174_v53, 16  ;;  %v657_v54 = vshll.u32 %v4174_v53, 16  ;;  %v654_v55 = vsel %vm594_vm3, %v650_v46, %v653_v50  ;;  %v754_v10 = vrot.slane %v4174_v53, 1 }
  0xbc   : > { %v431_v56 = vpop.permute.xlu0 %430  ;;  %705 = vrot.lane.b32.xlu0 %v654_v55, %s3799_s28  ;;  %v479_v4 = vpop.permute.xlu1 %478 }
  0xbd   : > { %v659_v57 = vrot.slane %v657_v54, 1  ;;  %v534_v58 = vsel %vm492_vm0, %v3942_v11, %v431_v56 }
  0xbe   : > { %v581_v59 = vsel %vm553_vm1, %v534_v58, %v479_v4 }
  0xbf   : > { %v661_v60 = vshll.u32 %v581_v59, 16  ;;  %v755_v62 = vrot.slane %v581_v59, 1  ;;  %v660_v63 = vor.u32 %v659_v57, %v655_v9  ;;  %v3683_v57 = vld [vmem:[%s5145_s4 + $0x40] sm:$0xff]  }
  0xc0   : > { %v433_v18 = vpop.permute.xlu0 %432  ;;  %v481_v19 = vpop.permute.xlu1 %480  ;;  %3259 = vmatprep.subr.bf16.mxu1 %v3683_v57  ;;  %v3701_v57 = vld [vmem:[%s5145_s4 + $0x78] sm:$0xff]  }
  0xc1   : > { %v663_v20 = vrot.slane %v661_v60, 1  ;;  %v537_v21 = vsel %vm492_vm0, %v3949_v12, %v433_v18  ;;  %v756_v5 = vsel %vm735_vm2, %v754_v10, %v755_v62 }
  0xc2   : > { %v4189_v23 = vsel %vm553_vm1, %v537_v21, %v481_v19  ;;  %778 = vrot.lane.b32.xlu1 %v756_v5, %s3798_s20  ;;  %v3684_v21 = vld [vmem:[%s5145_s4] sm:$0xff]  }
  0xc3   : > { %v665_v11 = vshrl.u32 %v4189_v23, 16  ;;  %v667_v24 = vshll.u32 %v4189_v23, 16  ;;  %v664_v25 = vsel %vm594_vm3, %v660_v63, %v663_v20  ;;  %v757_v12 = vrot.slane %v4189_v23, 1 }
  0xc4   : > { %v435_v26 = vpop.permute.xlu0 %434  ;;  %707 = vrot.lane.b32.xlu0 %v664_v25, %s3799_s28  ;;  %v483_v27 = vpop.permute.xlu1 %482  ;;  %v3685_v25 = vld [vmem:[%s5145_s4 + $0x48] sm:$0xff]  }
  0xc5   : > { %v669_v6 = vrot.slane %v667_v24, 1  ;;  %v540_v28 = vsel %vm492_vm0, %v3956_v13, %v435_v26 }
  0xc6   : > { %v585_v29 = vsel %vm553_vm1, %v540_v28, %v483_v27 }
  0xc7   : > { %v671_v30 = vshll.u32 %v585_v29, 16  ;;  %v758_v31 = vrot.slane %v585_v29, 1  ;;  %v670_v32 = vor.u32 %v669_v6, %v665_v11 }
  0xc8   : > { %v437_v33 = vpop.permute.xlu0 %436  ;;  %v485_v0 = vpop.permute.xlu1 %484 }
  0xc9   : > { %v673_v35 = vrot.slane %v671_v30, 1  ;;  %v543_v36 = vsel %vm492_vm0, %v3963_v14, %v437_v33  ;;  %v759_v37 = vsel %vm735_vm2, %v757_v12, %v758_v31 }
  0xca   : > { %v4204_v7 = vsel %vm553_vm1, %v543_v36, %v485_v0  ;;  %780 = vrot.lane.b32.xlu1 %v759_v37, %s3798_s20 }
  0xcb   : > { %v675_v13 = vshrl.u32 %v4204_v7, 16  ;;  %v677_v39 = vshll.u32 %v4204_v7, 16  ;;  %v674_v40 = vsel %vm594_vm3, %v670_v32, %v673_v35  ;;  %v760_v14 = vrot.slane %v4204_v7, 1 }
  0xcc   : > { %v439_v3 = vpop.permute.xlu0 %438  ;;  %709 = vrot.lane.b32.xlu0 %v674_v40, %s3799_s28  ;;  %v487_v22 = vpop.permute.xlu1 %486 }
  0xcd   : > { %v679_v41 = vrot.slane %v677_v39, 1  ;;  %v546_v8 = vsel %vm492_vm0, %v3970_v15, %v439_v3 }
  0xce   : > { %v589_v42 = vsel %vm553_vm1, %v546_v8, %v487_v22 }
  0xcf   : > { %v681_v43 = vshll.u32 %v589_v42, 16  ;;  %v761_v44 = vrot.slane %v589_v42, 1  ;;  %v680_v45 = vor.u32 %v679_v41, %v675_v13 }
  0xd0   : > { %v489_v50 = vpop.permute.xlu1 %488  ;;  %v441_v2 = vpop.permute.xlu0 %440 }
  0xd1   : > { %v683_v46 = vrot.slane %v681_v43, 1  ;;  %v762_v47 = vsel %vm735_vm2, %v760_v14, %v761_v44  ;;  %v549_v52 = vsel %vm492_vm0, %v3977_v16, %v441_v2  ;;  %v3694_v2 = vld [vmem:[%s5145_s4 + $0x88] sm:$0xff]  }
  0xd2   : > { %782 = vrot.lane.b32.xlu1 %v762_v47, %s3798_s20  ;;  %v4222_v9 = vsel %vm553_vm1, %v549_v52, %v489_v50  ;;  %v3691_v47 = vld [vmem:[%s5145_s4 + $0x80] sm:$0xff]   ;;  %v3695_v52 = vld [vmem:[%s5145_s4 + $0x68] sm:$0xff]  }
  0xd3   : > { %v684_v49 = vsel %vm594_vm3, %v680_v45, %v683_v46  ;;  %v687_v55 = vshll.u32 %v4222_v9, 16  ;;  %v685_v58 = vshrl.u32 %v4222_v9, 16  ;;  %v763_v19 = vrot.slane %v4222_v9, 1  ;;  %v3688_v45 = vld [vmem:[%s5145_s4 + $0x10] sm:$0xff]   ;;  %v3689_v46 = vld [vmem:[%s5145_s4 + $0x58] sm:$0xff]   ;;  %3499 = vmatprep.subr.bf16.mxu0 %v3691_v47  ;;  %v3693_v50 = vld [vmem:[%s5145_s4 + $0x20] sm:$0xff]  }
  0xd4   : > { %711 = vrot.lane.b32.xlu0 %v684_v49, %s3799_s28  ;;  %v3692_v49 = vld [vmem:[%s5145_s4 + $0x60] sm:$0xff]  }
  0xd5   : > { %v689_v62 = vrot.slane %v687_v55, 1  ;;  %v3698_v55 = vld [vmem:[%s5145_s4 + $0x70] sm:$0xff]  }
  0xd7   : > { %v690_v24 = vor.u32 %v689_v62, %v685_v58  ;;  %v3704_v58 = vld [vmem:[%s5145_s4 + $0xa8] sm:$0xff]  }
 0x103   : > { %v767_v15 = vpop.permute.xlu1 %766 }
 0x104   : > { %2908 = vmatprep.mubr.msk.bf16.mxu0 %vm492_vm0, %v767_v15 }
 0x107   : > { %v696_v54 = vpop.permute.xlu0 %695  ;;  %v491_v4 = vpop.permute.xlu1 %490 }
 0x108   : > { %v788_v56 = vsel %vm786_vm4, %v4082_v48, %v696_v54  ;;  %v3697_v54 = vld [vmem:[%s5145_s4 + $0x90] sm:$0xff]  }
 0x109   : > { %v809_v16 = vsel %vm807_vm5, %v788_v56, %v767_v15  ;;  %v3696_v15 = vld [vmem:[%s5145_s4 + $0x28] sm:$0xff]   ;;  %v3699_v56 = vld [vmem:[%s5145_s4 + $0x30] sm:$0xff]  }
 0x10a   : > { %970 = vmatmul.mubr.bf16.vlgmr.msra.gmra.mrb[0].mxu0 %v809_v16  ;;  %v3702_v16 = vld [vmem:[%s5145_s4 + $0x38] sm:$0xff]  }
 0x10b   : > { %v443_v10 = vpop.permute.xlu0 %442  ;;  %3500 = vmatpush3.bf16.msra.mxu0 %v3691_v47 }
 0x10c   : > { %v552_v59 = vsel %vm492_vm0, %v3984_v17, %v443_v10  ;;  %v769_v60 = vpop.permute.xlu1 %768  ;;  %3501 = vmatprep.subr.bf16.mxu0 %v3694_v2  ;;  %v3703_v10 = vld [vmem:[%s5145_s4 + $0xa0] sm:$0xff]  }
 0x10d   : > { %v593_v63 = vsel %vm553_vm1, %v552_v59, %v491_v4  ;;  %2909 = vmatprep.mubr.msk.bf16.mxu0 %vm492_vm0, %v769_v60  ;;  %2929 = vmatprep.mubr.msk.bf16.mxu1 %vm492_vm0, %v769_v60  ;;  %v3700_v4 = vld [vmem:[%s5145_s4 + $0x98] sm:$0xff]   ;;  %v3705_v59 = vld [vmem:[%s5145_s4 + $0xb0] sm:$0xff]   ;;  %vm4416_vm1 = vmand %vm1417_vm14, %vm1418_vm15 }
 0x10e   : > { %v691_v48 = vshll.u32 %v593_v63, 16  ;;  %v764_v18 = vrot.slane %v593_v63, 1 }
 0x10f   : > { %v698_v20 = vpop.permute.xlu0 %697  ;;  %3502 = vmatpush3.bf16.msra.mxu0 %v3694_v2 }
 0x110   : > { %v693_v5 = vrot.slane %v691_v48, 1  ;;  %v790_v17 = vsel %vm786_vm4, %v4095_v61, %v698_v20  ;;  %v765_v11 = vsel %vm735_vm2, %v763_v19, %v764_v18  ;;  %v3686_v61 = vld [vmem:[%s5145_s4 + $0x8] sm:$0xff]   ;;  %3503 = vmatprep.subr.bf16.mxu0 %v3697_v54  ;;  %v4357_v19 = vld [vmem:[%s5145_s4 + $0x140] sm:$0xff]  }
 0x111   : > { %784 = vrot.lane.b32.xlu1 %v765_v11, %s3798_s20  ;;  %v812_v26 = vsel %vm807_vm5, %v790_v17, %v769_v60  ;;  %v3706_v60 = vld [vmem:[%s5145_s4 + $0xb8] sm:$0xff]   ;;  %v3719_v20 = vld [vmem:[%s5145_s4 + $0x100] sm:$0xff]   ;;  %s2869_s20 = sshll.u32 %s5198_s22, 5 }
 0x112   : > { %978 = vmatmul.mubr.bf16.gmra.mrb[4].mxu0 %v812_v26  ;;  %1273 = vmatmul.mubr.bf16.vlgmr.msra.gmra.mrb[0].mxu1 %v812_v26  ;;  %v694_v27 = vsel %vm594_vm3, %v690_v24, %v693_v5  ;;  %s271_s21 = sadd.s32 %s2869_s20, %s5200_s19 }
 0x113   : > { %713 = vrot.lane.b32.xlu0 %v694_v27, %s3799_s28  ;;  %3260 = vmatpush3.bf16.msra.mxu1 %v3684_v21  ;;  %v4369_v21 = vstv %s2918_s11  ;;  %s2870_s22 = sshll.u32 %s271_s21, 2 }
 0x114   : > { %v771_v6 = vpop.permute.xlu1 %770  ;;  %3261 = vmatprep.subr.bf16.mxu1 %v3685_v25  ;;  %3504 = vmatpush3.bf16.msra.mxu0 %v3697_v54  ;;  %vm1081_vm6 = vcmp.ge.s32.totalorder %v4369_v21, 0  ;;  %vm1091_vm7 = vcmp.lt.s32.totalorder %v4369_v21, 16  ;;  %s5092_s10 = scalar_lea.vmem %s5147_s6, %s2870_s22 }
 0x115   : > { %2910 = vmatprep.mubr.msk.bf16.mxu0 %vm492_vm0, %v771_v6  ;;  %2930 = vmatprep.mubr.msk.bf16.mxu1 %vm492_vm0, %v771_v6  ;;  %vm4375_vm8 = vmand %vm1081_vm6, %vm1091_vm7 }
 0x116   : > { %v700_v12 = vpop.permute.xlu0 %699  ;;  %3505 = vmatprep.subr.bf16.mxu0 %v3700_v4 }
 0x117   : > { %v792_v28 = vsel %vm786_vm4, %v4114_v34, %v700_v12  ;;  %3262 = vmatpush3.bf16.msra.mxu1 %v3686_v61  ;;  %v1072_v12 = vadd.s32 1, %v4369_v21  ;;  %v3749_v61 = vld [vmem:[%s5145_s4 + $0x210] sm:$0xff]  }
 0x118   : > { %v815_v29 = vsel %vm807_vm5, %v792_v28, %v771_v6  ;;  %3506 = vmatpush3.bf16.msra.mxu0 %v3700_v4 }
 0x119   : > { %3507 = vmatprep.subr.bf16.mxu0 %v3703_v10  ;;  %vm1082_vm9 = vcmp.ge.s32.totalorder %v1072_v12, 0  ;;  %vm1092_vm10 = vcmp.lt.s32.totalorder %v1072_v12, 16 }
 0x11a   : > { %986 = vmatmul.mubr.bf16.gmra.mrb[8].mxu0 %v815_v29  ;;  %1281 = vmatmul.mubr.bf16.gmra.mrb[4].mxu1 %v815_v29  ;;  %vm4392_vm11 = vmand %vm1082_vm9, %vm1092_vm10 }
 0x11c   : > { %v773_v30 = vpop.permute.xlu1 %772  ;;  %3508 = vmatpush3.bf16.msra.mxu0 %v3703_v10 }
 0x11d   : > { %2911 = vmatprep.mubr.msk.bf16.mxu0 %vm492_vm0, %v773_v30  ;;  %2931 = vmatprep.mubr.msk.bf16.mxu1 %vm492_vm0, %v773_v30 }
 0x11e   : > { %v702_v31 = vpop.permute.xlu0 %701  ;;  %3509 = vmatprep.subr.bf16.mxu0 %v3704_v58 }
 0x11f   : > { %v794_v32 = vsel %vm786_vm4, %v4129_v51, %v702_v31 }
 0x120   : > { %v818_v33 = vsel %vm807_vm5, %v794_v32, %v773_v30  ;;  %3510 = vmatpush3.bf16.msra.mxu0 %v3704_v58 }
 0x121   : > { %3511 = vmatprep.subr.bf16.mxu0 %v3705_v59 }
 0x122   : > { %994 = vmatmul.mubr.bf16.gmra.mrb[12].mxu0 %v818_v33  ;;  %1289 = vmatmul.mubr.bf16.gmra.mrb[8].mxu1 %v818_v33 }
 0x124   : > { %v775_v0 = vpop.permute.xlu1 %774  ;;  %3512 = vmatpush3.bf16.msra.mxu0 %v3705_v59  ;;  %v1074_v59 = vadd.s32 3, %v4369_v21 }
 0x125   : > { %2912 = vmatprep.mubr.msk.bf16.mxu0 %vm492_vm0, %v775_v0  ;;  %2932 = vmatprep.mubr.msk.bf16.mxu1 %vm492_vm0, %v775_v0 }
 0x126   : > { %v704_v34 = vpop.permute.xlu0 %703  ;;  %3513 = vmatprep.subr.bf16.mxu0 %v3706_v60  ;;  %vm1084_vm2 = vcmp.ge.s32.totalorder %v1074_v59, 0 }
 0x127   : > { %v796_v35 = vsel %vm786_vm4, %v4144_v1, %v704_v34 }
 0x128   : > { %v821_v36 = vsel %vm807_vm5, %v796_v35, %v775_v0  ;;  %3514 = vmatpush3.bf16.msra.mxu0 %v3706_v60 }
 0x129   : > { %3339 = vmatprep.subr.bf16.mxu0 %v3719_v20 }
 0x12a   : > { %1002 = vmatmul.mubr.bf16.gmra.mrb[16].mxu0 %v821_v36  ;;  %1297 = vmatmul.mubr.bf16.gmra.mrb[12].mxu1 %v821_v36 }
 0x12c   : > { %v777_v37 = vpop.permute.xlu1 %776 }
 0x12d   : > { %2913 = vmatprep.mubr.msk.bf16.mxu0 %vm492_vm0, %v777_v37  ;;  %2933 = vmatprep.mubr.msk.bf16.mxu1 %vm492_vm0, %v777_v37 }
 0x12e   : > { %v706_v51 = vpop.permute.xlu0 %705 }
 0x12f   : > { %v798_v13 = vsel %vm786_vm4, %v4159_v38, %v706_v51 }
 0x130   : > { %v824_v39 = vsel %vm807_vm5, %v798_v13, %v777_v37 }
 0x132   : > { %1010 = vmatmul.mubr.bf16.gmra.mrb[20].mxu0 %v824_v39  ;;  %1305 = vmatmul.mubr.bf16.gmra.mrb[16].mxu1 %v824_v39 }
 0x134   : > { %v779_v40 = vpop.permute.xlu1 %778 }
 0x135   : > { %2914 = vmatprep.mubr.msk.bf16.mxu0 %vm492_vm0, %v779_v40  ;;  %2934 = vmatprep.mubr.msk.bf16.mxu1 %vm492_vm0, %v779_v40 }
 0x136   : > { %v708_v1 = vpop.permute.xlu0 %707 }
 0x137   : > { %v800_v3 = vsel %vm786_vm4, %v4174_v53, %v708_v1 }
 0x138   : > { %v827_v22 = vsel %vm807_vm5, %v800_v3, %v779_v40 }
 0x13a   : > { %1018 = vmatmul.mubr.bf16.gmra.mrb[24].mxu0 %v827_v22  ;;  %1313 = vmatmul.mubr.bf16.gmra.mrb[20].mxu1 %v827_v22 }
 0x13c   : > { %v781_v41 = vpop.permute.xlu1 %780 }
 0x13d   : > { %2915 = vmatprep.mubr.msk.bf16.mxu0 %vm492_vm0, %v781_v41  ;;  %2935 = vmatprep.mubr.msk.bf16.mxu1 %vm492_vm0, %v781_v41 }
 0x13e   : > { %v710_v38 = vpop.permute.xlu0 %709 }
 0x13f   : > { %v802_v14 = vsel %vm786_vm4, %v4189_v23, %v710_v38  ;;  %v3687_v23 = vld [vmem:[%s5145_s4 + $0x50] sm:$0xff]  }
 0x140   : > { %v830_v8 = vsel %vm807_vm5, %v802_v14, %v781_v41  ;;  %3263 = vmatprep.subr.bf16.mxu1 %v3687_v23  ;;  %v1073_v14 = vadd.s32 2, %v4369_v21  ;;  %v3752_v41 = vld [vmem:[%s5145_s4 + $0x228] sm:$0xff]  }
 0x141   : > { %3264 = vmatpush3.bf16.msra.mxu1 %v3688_v45 }
 0x142   : > { %1026 = vmatmul.mubr.bf16.gmra.mrb[28].mxu0 %v830_v8  ;;  %1321 = vmatmul.mubr.bf16.gmra.mrb[24].mxu1 %v830_v8  ;;  %vm1083_vm12 = vcmp.ge.s32.totalorder %v1073_v14, 0  ;;  %vm1093_vm13 = vcmp.lt.s32.totalorder %v1073_v14, 16 }
 0x143   : > { %3265 = vmatprep.subr.bf16.mxu1 %v3689_v46 }
 0x144   : > { %v783_v42 = vpop.permute.xlu1 %782 }
 0x145   : > { %2916 = vmatprep.mubr.msk.bf16.mxu0 %vm492_vm0, %v783_v42  ;;  %2936 = vmatprep.mubr.msk.bf16.mxu1 %vm492_vm0, %v783_v42 }
 0x146   : > { %v712_v53 = vpop.permute.xlu0 %711 }
 0x147   : > { %v804_v43 = vsel %vm786_vm4, %v4204_v7, %v712_v53  ;;  %v3690_v7 = vld [vmem:[%s5145_s4 + $0x18] sm:$0xff]  }
 0x148   : > { %v833_v44 = vsel %vm807_vm5, %v804_v43, %v783_v42  ;;  %3266 = vmatpush3.bf16.msra.mxu1 %v3690_v7 }
 0x149   : > { %3267 = vmatprep.subr.bf16.mxu1 %v3692_v49 }
 0x14a   : > { %1034 = vmatmul.mubr.bf16.gmra.mrb[32].mxu0 %v833_v44  ;;  %1329 = vmatmul.mubr.bf16.gmra.mrb[28].mxu1 %v833_v44 }
 0x14c   : > { %3268 = vmatpush3.bf16.msra.mxu1 %v3693_v50 }
 0x14d   : > { %3269 = vmatprep.subr.bf16.mxu1 %v3695_v52 }
 0x150   : > { %3270 = vmatpush3.bf16.msra.mxu1 %v3696_v15 }
 0x151   : > { %3271 = vmatprep.subr.bf16.mxu1 %v3698_v55 }
 0x154   : > { %3272 = vmatpush3.bf16.msra.mxu1 %v3699_v56 }
 0x155   : > { %3273 = vmatprep.subr.bf16.mxu1 %v3701_v57  ;;  %v3716_v57 = vld [vmem:[%s5145_s4 + $0x180] sm:$0xff]  }
 0x158   : > { %3274 = vmatpush3.bf16.msra.mxu1 %v3702_v16 }
 0x159   : > { %3531 = vmatprep.subr.bf16.mxu1 %v4357_v19 }
 0x183   : > { %v785_v62 = vpop.permute.xlu1 %784 }
 0x184   : > { %2917 = vmatprep.mubr.msk.bf16.mxu0 %vm492_vm0, %v785_v62  ;;  %vm4411_vm0 = vmand %vm1083_vm12, %vm1093_vm13 }
 0x185   : > { %v714_v63 = vpop.permute.xlu0 %713 }
 0x186   : > { %v806_v48 = vsel %vm786_vm4, %v4222_v9, %v714_v63  ;;  %v4367_v9 = vld [vmem:[%s5144_s3] ss:$0 sm:$0xff]  ;;  %vm1094_vm4 = vcmp.lt.s32.totalorder %v1074_v59, 16  ;;  %v3718_v59 = vld [vmem:[%s5145_s4 + $0x188] sm:$0xff]  }
 0x187   : > { %v836_v18 = vsel %vm807_vm5, %v806_v48, %v785_v62  ;;  %vm4444_vm5 = vmand %vm1084_vm2, %vm1094_vm4 }
 0x188   : > { %1042 = vmatmul.mubr.bf16.gmra.mrb[36].mxu0 %v836_v18 }
 0x1dd   : > { %v971_v5 = vpop.f32.mrb[0].mxu0 }
 0x1de   : > { %v972_v17 = vadd.f32 %v4367_v9, %v971_v5  ;;  %v973_v11 = vpop.f32.mrb[1].mxu0 }
 0x1df   : > { %v974_v24 = vpop.f32.mrb[2].mxu0 }
 0x1e0   : > { %v1050_v25 = vmax.f32 %v972_v17, 0.0  ;;  %v975_v26 = vadd.f32 %v4367_v9, %v974_v24  ;;  %v976_v27 = vpop.f32.mrb[3].mxu0 }
 0x1e2   : > { %v1051_v6 = vmax.f32 %v975_v26, 0.0  ;;  %v1131_v28 = vsel %vm4375_vm8, %v1050_v25, 0.0  ;;  %v3708_v26 = vld [vmem:[%s5145_s4 + $0x148] sm:$0xff]  }
 0x1e4   : > { %v1132_v29 = vsel %vm4375_vm8, %v1051_v6, 0.0  ;;  %v4384_v30 = vpack.c.bf16 %v1051_v6, %v1050_v25 }
 0x1e5   : > { %v1151_v31 = vpack.c.bf16 %v1132_v29, %v1131_v28  ;;  %v979_v32 = vpop.f32.mrb[4].mxu0  ;;  %v4386_v33 = vpop.f32.mrb[0].mxu1 }
 0x1e6   : > { %v980_v0 = vadd.f32 %v4367_v9, %v979_v32  ;;  %v981_v34 = vpop.f32.mrb[5].mxu0  ;;  %v1276_v35 = vpop.f32.mrb[1].mxu1 }
 0x1e7   : > { %v1341_v36 = vshll.u32 %v1151_v31, 16  ;;  %v982_v37 = vpop.f32.mrb[6].mxu0  ;;  %v4389_v51 = vpop.f32.mrb[2].mxu1  ;;  %v1338_v3 = vshrl.u32 %v1151_v31, 16 }
 0x1e8   : > { %v1052_v13 = vmax.f32 %v980_v0, 0.0  ;;  %v983_v39 = vadd.f32 %v4367_v9, %v982_v37  ;;  %v984_v40 = vpop.f32.mrb[7].mxu0  ;;  %v1279_v1 = vpop.f32.mrb[3].mxu1 }
 0x1e9   : > { %v1430_v22 = vrot.slane %v1341_v36, 1  ;;  %v1340_v46 = vrot.slane %v1338_v3, 7  ;;  %v3709_v40 = vld [vmem:[%s5145_s4 + $0x150] sm:$0xff]  }
 0x1ea   : > { %v1053_v38 = vmax.f32 %v983_v39, 0.0  ;;  %v1133_v42 = vsel %vm4392_vm11, %v1052_v13, 0.0 }
 0x1eb   : > { %v4397_v8 = vor.u32 %v1430_v22, %v1338_v3  ;;  %v1343_v60 = vor.u32 %v1341_v36, %v1340_v46  ;;  %v1075_v22 = vadd.s32 4, %v4369_v21 }
 0x1ec   : > { %v1134_v53 = vsel %vm4392_vm11, %v1053_v38, 0.0  ;;  %v4403_v43 = vpack.c.bf16 %v1053_v38, %v1052_v13  ;;  %v3717_v13 = vld [vmem:[%s5145_s4 + $0x1c8] sm:$0xff]  }
 0x1ed   : > { %v1152_v44 = vpack.c.bf16 %v1134_v53, %v1133_v42  ;;  %v987_v23 = vpop.f32.mrb[8].mxu0  ;;  %v4405_v45 = vpop.f32.mrb[4].mxu1  ;;  %v1420_v28 = vsel %vm4416_vm1, 0, %v1343_v60  ;;  %vm1085_vm6 = vcmp.ge.s32.totalorder %v1075_v22, 0  ;;  %vm1095_vm7 = vcmp.lt.s32.totalorder %v1075_v22, 16 }
 0x1ee   : > { %v988_v7 = vadd.f32 %v4367_v9, %v987_v23  ;;  %v989_v47 = vpop.f32.mrb[9].mxu0  ;;  %v1284_v49 = vpop.f32.mrb[5].mxu1  ;;  %vm4473_vm9 = vmand %vm1085_vm6, %vm1095_vm7 }
 0x1ef   : > { %v1345_v50 = vshrl.u32 %v1152_v44, 16  ;;  %v990_v2 = vpop.f32.mrb[10].mxu0  ;;  %v4408_v52 = vpop.f32.mrb[6].mxu1  ;;  %v1348_v15 = vshll.u32 %v1152_v44, 16  ;;  %v3710_v47 = vld [vmem:[%s5145_s4 + $0x158] sm:$0xff]  }
 0x1f0   : > { %v1054_v54 = vmax.f32 %v988_v7, 0.0  ;;  %v991_v55 = vadd.f32 %v4367_v9, %v990_v2  ;;  %v992_v56 = vpop.f32.mrb[11].mxu0  ;;  %v1287_v4 = vpop.f32.mrb[7].mxu1 }
 0x1f1   : > { %v1347_v16 = vrot.slane %v1345_v50, 7  ;;  %v1432_v10 = vrot.slane %v1348_v15, 1 }
 0x1f2   : > { %v1055_v58 = vmax.f32 %v991_v55, 0.0  ;;  %v1135_v18 = vsel %vm4411_vm0, %v1054_v54, 0.0 }
 0x1f3   : > { %v1350_v62 = vor.u32 %v1348_v15, %v1347_v16  ;;  %v4420_v48 = vor.u32 %v1432_v10, %v1345_v50 }
 0x1f4   : > { %v1136_v20 = vsel %vm4411_vm0, %v1055_v58, 0.0  ;;  %v4426_v5 = vpack.c.bf16 %v1055_v58, %v1054_v54 }
 0x1f5   : > { %v1153_v17 = vpack.c.bf16 %v1136_v20, %v1135_v18  ;;  %v995_v11 = vpop.f32.mrb[12].mxu0  ;;  %v4428_v24 = vpop.f32.mrb[8].mxu1  ;;  %v1421_v25 = vsel %vm4416_vm1, 0, %v1350_v62  ;;  %v3711_v62 = vld [vmem:[%s5145_s4 + $0x160] sm:$0xff]  }
 0x1f6   : > { %v996_v27 = vadd.f32 %v4367_v9, %v995_v11  ;;  %v997_v6 = vpop.f32.mrb[13].mxu0  ;;  %v1292_v12 = vpop.f32.mrb[9].mxu1  ;;  %1696 = vmatprep.mubr.bf16.mxu1 %v1421_v25 }
 0x1f7   : > { %v1352_v29 = vshrl.u32 %v1153_v17, 16  ;;  %v998_v31 = vpop.f32.mrb[14].mxu0  ;;  %v4438_v32 = vpop.f32.mrb[10].mxu1  ;;  %1697 = vmatmul.mubr.bf16.vlgmr.msra.gmra.mrb[32].mxu1 %v1420_v28  ;;  %v1355_v0 = vshll.u32 %v1153_v17, 16  ;;  %v1076_v17 = vadd.s32 5, %v4369_v21  ;;  %v3723_v28 = vld [vmem:[%s5145_s4 + $0x108] sm:$0xff]  }
 0x1f8   : > { %v1056_v34 = vmax.f32 %v996_v27, 0.0  ;;  %v999_v35 = vadd.f32 %v4367_v9, %v998_v31  ;;  %v1000_v36 = vpop.f32.mrb[15].mxu0  ;;  %v1295_v37 = vpop.f32.mrb[11].mxu1  ;;  %3532 = vmatpush3.bf16.msra.mxu1 %v4357_v19 }
 0x1f9   : > { %v1354_v39 = vrot.slane %v1352_v29, 7  ;;  %3533 = vmatprep.subr.bf16.mxu1 %v3708_v26  ;;  %v1434_v1 = vrot.slane %v1355_v0, 1  ;;  %vm1086_vm10 = vcmp.ge.s32.totalorder %v1076_v17, 0  ;;  %vm1096_vm12 = vcmp.lt.s32.totalorder %v1076_v17, 16 }
 0x1fa   : > { %v1057_v3 = vmax.f32 %v999_v35, 0.0  ;;  %v1137_v19 = vsel %vm4444_vm5, %v1056_v34, 0.0  ;;  %v3712_v35 = vld [vmem:[%s5145_s4 + $0x168] sm:$0xff]   ;;  %vm4514_vm13 = vmand %vm1086_vm10, %vm1096_vm12 }
 0x1fb   : > { %v1357_v38 = vor.u32 %v1355_v0, %v1354_v39  ;;  %v4452_v14 = vor.u32 %v1434_v1, %v1352_v29 }
 0x1fc   : > { %v1138_v42 = vsel %vm4444_vm5, %v1057_v3, 0.0  ;;  %v4458_v53 = vpack.c.bf16 %v1057_v3, %v1056_v34  ;;  %3534 = vmatpush3.bf16.msra.mxu1 %v3708_v26 }
 0x1fd   : > { %v1154_v44 = vpack.c.bf16 %v1138_v42, %v1137_v19  ;;  %v1003_v23 = vpop.f32.mrb[16].mxu0  ;;  %v4460_v46 = vpop.f32.mrb[12].mxu1  ;;  %v1422_v7 = vsel %vm4416_vm1, 0, %v1357_v38  ;;  %3535 = vmatprep.subr.bf16.mxu1 %v3709_v40  ;;  %v3724_v38 = vld [vmem:[%s5145_s4 + $0xc8] sm:$0xff]  }
 0x1fe   : > { %v1004_v49 = vadd.f32 %v4367_v9, %v1003_v23  ;;  %v1005_v50 = vpop.f32.mrb[17].mxu0  ;;  %v1300_v2 = vpop.f32.mrb[13].mxu1  ;;  %1704 = vmatprep.mubr.bf16.mxu1 %v1422_v7  ;;  %3515 = vmatprep.mubr.bf16.mxu0 %v1422_v7 }
 0x1ff   : > { %v1359_v15 = vshrl.u32 %v1154_v44, 16  ;;  %v1006_v54 = vpop.f32.mrb[18].mxu0  ;;  %v4468_v55 = vpop.f32.mrb[14].mxu1  ;;  %1705 = vmatmul.mubr.bf16.gmra.mrb[36].mxu1 %v1421_v25  ;;  %v1362_v56 = vshll.u32 %v1154_v44, 16  ;;  %v3720_v25 = vld [vmem:[%s5145_s4 + $0xc0] sm:$0xff]   ;;  %v3713_v50 = vld [vmem:[%s5145_s4 + $0x170] sm:$0xff]  }
 0x200   : > { %v1058_v4 = vmax.f32 %v1004_v49, 0.0  ;;  %v1007_v16 = vadd.f32 %v4367_v9, %v1006_v54  ;;  %v1008_v10 = vpop.f32.mrb[19].mxu0  ;;  %v1303_v58 = vpop.f32.mrb[15].mxu1  ;;  %3536 = vmatpush3.bf16.msra.mxu1 %v3709_v40  ;;  %v1077_v54 = vadd.s32 6, %v4369_v21 }
 0x201   : > { %v1361_v60 = vrot.slane %v1359_v15, 7  ;;  %3537 = vmatprep.subr.bf16.mxu1 %v3710_v47  ;;  %v1436_v18 = vrot.slane %v1362_v56, 1 }
 0x202   : > { %v1059_v20 = vmax.f32 %v1007_v16, 0.0  ;;  %v1139_v27 = vsel %vm4473_vm9, %v1058_v4, 0.0  ;;  %vm1087_vm14 = vcmp.ge.s32.totalorder %v1077_v54, 0  ;;  %vm1097_vm15 = vcmp.lt.s32.totalorder %v1077_v54, 16 }
 0x203   : > { %v1364_v11 = vor.u32 %v1362_v56, %v1361_v60  ;;  %v4484_v26 = vor.u32 %v1436_v18, %v1359_v15  ;;  %vm4555_vm2 = vmand %vm1087_vm14, %vm1097_vm15 }
 0x204   : > { %v1140_v6 = vsel %vm4473_vm9, %v1059_v20, 0.0  ;;  %v4490_v12 = vpack.c.bf16 %v1059_v20, %v1058_v4  ;;  %3538 = vmatpush3.bf16.msra.mxu1 %v3710_v47  ;;  %v3727_v47 = vld [vmem:[%s5145_s4 + $0x110] sm:$0xff]   ;;  %vm4652_vm15 = vmpackc.low %vm4411_vm0, %vm4411_vm0 }
 0x205   : > { %v1155_v29 = vpack.c.bf16 %v1140_v6, %v1139_v27  ;;  %v1011_v31 = vpop.f32.mrb[20].mxu0  ;;  %v4495_v0 = vpop.f32.mrb[16].mxu1  ;;  %v1423_v34 = vsel %vm4416_vm1, 0, %v1364_v11  ;;  %3539 = vmatprep.subr.bf16.mxu1 %v3711_v62  ;;  %v3728_v4 = vld [vmem:[%s5145_s4 + $0xd0] sm:$0xff]   ;;  %vm4672_vm0 = vmpackc.low %vm4473_vm9, %vm4473_vm9 }
 0x206   : > { %v1012_v36 = vadd.f32 %v4367_v9, %v1011_v31  ;;  %v1013_v37 = vpop.f32.mrb[21].mxu0  ;;  %v1308_v39 = vpop.f32.mrb[17].mxu1  ;;  %1712 = vmatprep.mubr.bf16.mxu1 %v1423_v34  ;;  %3516 = vmatmul.mubr.bf16.vlgmr.msra.gmra.mrb[40].mxu0 %v1423_v34  ;;  %vm4704_vm9 = vmpackc.low %vm4555_vm2, %vm4555_vm2 }
 0x207   : > { %v1366_v40 = vshrl.u32 %v1155_v29, 16  ;;  %v1014_v1 = vpop.f32.mrb[22].mxu0  ;;  %v4503_v3 = vpop.f32.mrb[18].mxu1  ;;  %1713 = vmatmul.mubr.bf16.gmra.mrb[40].mxu1 %v1422_v7  ;;  %v1369_v22 = vshll.u32 %v1155_v29, 16  ;;  %3340 = vmatpush3.bf16.msra.mxu0 %v3720_v25  ;;  %v3714_v25 = vld [vmem:[%s5145_s4 + $0x178] sm:$0xff]  }
 0x208   : > { %v1060_v19 = vmax.f32 %v1012_v36, 0.0  ;;  %v1015_v42 = vadd.f32 %v4367_v9, %v1014_v1  ;;  %v1016_v44 = vpop.f32.mrb[23].mxu0  ;;  %v1311_v23 = vpop.f32.mrb[19].mxu1  ;;  %3540 = vmatpush3.bf16.msra.mxu1 %v3711_v62  ;;  %3341 = vmatprep.subr.bf16.mxu0 %v3723_v28  ;;  %v3731_v62 = vld [vmem:[%s5145_s4 + $0x118] sm:$0xff]  }
 0x209   : > { %v1368_v49 = vrot.slane %v1366_v40, 7  ;;  %3541 = vmatprep.subr.bf16.mxu1 %v3712_v35  ;;  %v1438_v2 = vrot.slane %v1369_v22, 1  ;;  %v3732_v37 = vld [vmem:[%s5145_s4 + $0xd8] sm:$0xff]  }
 0x20a   : > { %v1061_v15 = vmax.f32 %v1015_v42, 0.0  ;;  %v1141_v10 = vsel %vm4514_vm13, %v1060_v19, 0.0  ;;  %v3715_v42 = vld [vmem:[%s5145_s4 + $0x1c0] sm:$0xff]   ;;  %v3725_v7 = vld [vmem:[%s5145_s4 + $0x1d8] sm:$0xff]  }
 0x20b   : > { %v1371_v56 = vor.u32 %v1369_v22, %v1368_v49  ;;  %3342 = vmatpush3.bf16.msra.mxu0 %v3724_v38  ;;  %v4525_v16 = vor.u32 %v1438_v2, %v1366_v40  ;;  %v3735_v38 = vld [vmem:[%s5145_s4 + $0x120] sm:$0xff]  }
 0x20c   : > { %v1142_v58 = vsel %vm4514_vm13, %v1061_v15, 0.0  ;;  %v4531_v60 = vpack.c.bf16 %v1061_v15, %v1060_v19  ;;  %3542 = vmatpush3.bf16.msra.mxu1 %v3712_v35  ;;  %3343 = vmatprep.subr.bf16.mxu0 %v3727_v47  ;;  %v1078_v47 = vadd.s32 7, %v4369_v21 }
 0x20d   : > { %v1156_v18 = vpack.c.bf16 %v1142_v58, %v1141_v10  ;;  %v1019_v20 = vpop.f32.mrb[24].mxu0  ;;  %v4536_v17 = vpop.f32.mrb[20].mxu1  ;;  %v1424_v11 = vsel %vm4416_vm1, 0, %v1371_v56  ;;  %3543 = vmatprep.subr.bf16.mxu1 %v3713_v50 }
 0x20e   : > { %v1020_v27 = vadd.f32 %v4367_v9, %v1019_v20  ;;  %v1021_v6 = vpop.f32.mrb[25].mxu0  ;;  %v1316_v28 = vpop.f32.mrb[21].mxu1  ;;  %1720 = vmatprep.mubr.bf16.mxu1 %v1424_v11  ;;  %3519 = vmatprep.mubr.bf16.mxu0 %v1424_v11  ;;  %vm1088_vm4 = vcmp.ge.s32.totalorder %v1078_v47, 0  ;;  %vm1098_vm6 = vcmp.lt.s32.totalorder %v1078_v47, 16 }
 0x20f   : > { %v1373_v29 = vshrl.u32 %v1156_v18, 16  ;;  %v1022_v31 = vpop.f32.mrb[26].mxu0  ;;  %v4544_v35 = vpop.f32.mrb[22].mxu1  ;;  %1721 = vmatmul.mubr.bf16.gmra.mrb[44].mxu1 %v1423_v34  ;;  %v1376_v36 = vshll.u32 %v1156_v18, 16  ;;  %3344 = vmatpush3.bf16.msra.mxu0 %v3728_v4  ;;  %v3739_v4 = vld [vmem:[%s5145_s4 + $0x128] sm:$0xff]   ;;  %vm4593_vm7 = vmand %vm1088_vm4, %vm1098_vm6  ;;  %v3726_v34 = vld [vmem:[%s5145_s4 + $0x198] sm:$0xff]  }
 0x210   : > { %v1062_v39 = vmax.f32 %v1020_v27, 0.0  ;;  %v1023_v40 = vadd.f32 %v4367_v9, %v1022_v31  ;;  %v1024_v1 = vpop.f32.mrb[27].mxu0  ;;  %v1319_v22 = vpop.f32.mrb[23].mxu1  ;;  %3544 = vmatpush3.bf16.msra.mxu1 %v3713_v50  ;;  %3345 = vmatprep.subr.bf16.mxu0 %v3731_v62  ;;  %v3736_v50 = vld [vmem:[%s5145_s4 + $0xe0] sm:$0xff]   ;;  %vm4662_vm4 = vmpackc.low %vm4444_vm5, %vm4444_vm5 }
 0x211   : > { %v1375_v19 = vrot.slane %v1373_v29, 7  ;;  %3545 = vmatprep.subr.bf16.mxu1 %v3714_v25  ;;  %v1440_v44 = vrot.slane %v1376_v36, 1  ;;  %v3743_v22 = vld [vmem:[%s5145_s4 + $0x130] sm:$0xff]   ;;  %vm4694_vm5 = vmpackc.low %vm4514_vm13, %vm4514_vm13 }
 0x212   : > { %v1063_v23 = vmax.f32 %v1023_v40, 0.0  ;;  %v1143_v15 = vsel %vm4555_vm2, %v1062_v39, 0.0  ;;  %vm4726_vm13 = vmpackc.low %vm4593_vm7, %vm4593_vm7 }
 0x213   : > { %v1378_v49 = vor.u32 %v1376_v36, %v1375_v19  ;;  %3346 = vmatpush3.bf16.msra.mxu0 %v3732_v37  ;;  %v4566_v2 = vor.u32 %v1440_v44, %v1373_v29  ;;  %v3740_v36 = vld [vmem:[%s5145_s4 + $0xe8] sm:$0xff]   ;;  %v1079_v44 = vadd.s32 8, %v4369_v21 }
 0x214   : > { %v1144_v54 = vsel %vm4555_vm2, %v1063_v23, 0.0  ;;  %v4572_v56 = vpack.c.bf16 %v1063_v23, %v1062_v39  ;;  %3546 = vmatpush3.bf16.msra.mxu1 %v3714_v25  ;;  %3347 = vmatprep.subr.bf16.mxu0 %v3735_v38 }
 0x215   : > { %v1157_v10 = vpack.c.bf16 %v1144_v54, %v1143_v15  ;;  %v1027_v58 = vpop.f32.mrb[28].mxu0  ;;  %v4577_v62 = vpop.f32.mrb[24].mxu1  ;;  %v1425_v18 = vsel %vm4416_vm1, 0, %v1378_v49  ;;  %3419 = vmatprep.subr.bf16.mxu1 %v3715_v42  ;;  %v3744_v49 = vld [vmem:[%s5145_s4 + $0xf0] sm:$0xff]   ;;  %vm1089_vm10 = vcmp.ge.s32.totalorder %v1079_v44, 0  ;;  %vm1099_vm12 = vcmp.lt.s32.totalorder %v1079_v44, 16 }
 0x216   : > { %v1028_v20 = vadd.f32 %v4367_v9, %v1027_v58  ;;  %v1029_v27 = vpop.f32.mrb[29].mxu0  ;;  %v1324_v6 = vpop.f32.mrb[25].mxu1  ;;  %1728 = vmatprep.mubr.bf16.mxu1 %v1425_v18  ;;  %3520 = vmatmul.mubr.bf16.gmra.mrb[44].mxu0 %v1425_v18  ;;  %vm4630_vm14 = vmand %vm1089_vm10, %vm1099_vm12  ;;  %vm1460_vm12 = vcmask 1047552  }
 0x217   : > { %v1380_v25 = vshrl.u32 %v1157_v10, 16  ;;  %v1030_v28 = vpop.f32.mrb[30].mxu0  ;;  %v4582_v29 = vpop.f32.mrb[26].mxu1  ;;  %1729 = vmatmul.mubr.bf16.gmra.mrb[48].mxu1 %v1424_v11  ;;  %v1383_v31 = vshll.u32 %v1157_v10, 16  ;;  %3348 = vmatpush3.bf16.msra.mxu0 %v3736_v50  ;;  %vm5148_vm2 = vmpackc.low %vm4630_vm14, %vm4630_vm14  ;;  %v3734_v11 = vld [vmem:[%s5145_s4 + $0x1a8] sm:$0xff]  }
 0x218   : > { %v1064_v37 = vmax.f32 %v1028_v20, 0.0  ;;  %v1031_v39 = vadd.f32 %v4367_v9, %v1030_v28  ;;  %v1032_v40 = vpop.f32.mrb[31].mxu0  ;;  %v1327_v1 = vpop.f32.mrb[27].mxu1  ;;  %3349 = vmatprep.subr.bf16.mxu0 %v3739_v4  ;;  %v3745_v4 = vld [vmem:[%s5145_s4 + $0x138] sm:$0xff]  }
 0x219   : > { %v1382_v38 = vrot.slane %v1380_v25, 7  ;;  %v1442_v19 = vrot.slane %v1383_v31, 1  ;;  %v3746_v40 = vld [vmem:[%s5145_s4 + $0xf8] sm:$0xff]  }
 0x21a   : > { %v1065_v42 = vmax.f32 %v1031_v39, 0.0  ;;  %v1145_v47 = vsel %vm4593_vm7, %v1064_v37, 0.0 }
 0x21b   : > { %v1385_v23 = vor.u32 %v1383_v31, %v1382_v38  ;;  %3350 = vmatpush3.bf16.msra.mxu0 %v3740_v36  ;;  %v4601_v50 = vor.u32 %v1442_v19, %v1380_v25 }
 0x21c   : > { %v1146_v15 = vsel %vm4593_vm7, %v1065_v42, 0.0  ;;  %v4607_v54 = vpack.c.bf16 %v1065_v42, %v1064_v37  ;;  %3351 = vmatprep.subr.bf16.mxu0 %v3743_v22  ;;  %v4626_v42 = vld [vmem:[%s5145_s4 + $0x200] sm:$0xff]  }
 0x21d   : > { %v1158_v10 = vpack.c.bf16 %v1146_v15, %v1145_v47  ;;  %v1035_v58 = vpop.f32.mrb[32].mxu0  ;;  %v4612_v20 = vpop.f32.mrb[28].mxu1  ;;  %v1426_v27 = vsel %vm4416_vm1, 0, %v1385_v23 }
 0x21e   : > { %v1036_v6 = vadd.f32 %v4367_v9, %v1035_v58  ;;  %v1037_v25 = vpop.f32.mrb[33].mxu0  ;;  %v1332_v28 = vpop.f32.mrb[29].mxu1  ;;  %1736 = vmatprep.mubr.bf16.mxu1 %v1426_v27  ;;  %3523 = vmatprep.mubr.bf16.mxu0 %v1426_v27 }
 0x21f   : > { %v1387_v31 = vshrl.u32 %v1158_v10, 16  ;;  %v1038_v36 = vpop.f32.mrb[34].mxu0  ;;  %v4617_v37 = vpop.f32.mrb[30].mxu1  ;;  %1737 = vmatmul.mubr.bf16.gmra.mrb[52].mxu1 %v1425_v18  ;;  %v1390_v39 = vshll.u32 %v1158_v10, 16  ;;  %3352 = vmatpush3.bf16.msra.mxu0 %v3744_v49  ;;  %v5169_v18 = vmov 0 }
 0x220   : > { %v1066_v1 = vmax.f32 %v1036_v6, 0.0  ;;  %v1039_v22 = vadd.f32 %v4367_v9, %v1038_v36  ;;  %v1040_v38 = vpop.f32.mrb[35].mxu0  ;;  %v1335_v19 = vpop.f32.mrb[31].mxu1  ;;  %3353 = vmatprep.subr.bf16.mxu0 %v3745_v4  ;;  %v5170_v18 = vsel %vm4630_vm14, 4294967295, %v5169_v18 }
 0x221   : > { %v1389_v23 = vrot.slane %v1387_v31, 7  ;;  %v1444_v49 = vrot.slane %v1390_v39, 1 }
 0x222   : > { %v1067_v47 = vmax.f32 %v1039_v22, 0.0  ;;  %v1147_v4 = vsel %vm4630_vm14, %v1066_v1, 0.0 }
 0x223   : > { %v1392_v15 = vor.u32 %v1390_v39, %v1389_v23  ;;  %3354 = vmatpush3.bf16.msra.mxu0 %v3746_v40  ;;  %v4634_v10 = vor.u32 %v1444_v49, %v1387_v31  ;;  %v3721_v23 = vld [vmem:[%s5145_s4 + $0x1d0] sm:$0xff]  }
 0x224   : > { %v1148_v58 = vsel %vm4630_vm14, %v1067_v47, 0.0  ;;  %v4640_v6 = vpack.c.bf16 %v1067_v47, %v1066_v1  ;;  %3563 = vmatprep.subr.bf16.mxu0 %v4626_v42  ;;  %v3722_v47 = vld [vmem:[%s5145_s4 + $0x190] sm:$0xff]   ;;  %vm4767_vm14 = vmand %vm1460_vm12, %vm594_vm3 }
 0x225   : > { %v1159_v44 = vpack.c.bf16 %v1148_v58, %v1147_v4  ;;  %v1427_v25 = vsel %vm4416_vm1, 0, %v1392_v15  ;;  %v3729_v4 = vld [vmem:[%s5145_s4 + $0x1e0] sm:$0xff]   ;;  %vm3033_vm3 = vmpackc.low %vm4392_vm11, %vm4392_vm11  ;;  %v1465_v63 = vsel %vm4767_vm14, %v4484_v26, 0 }
 0x226   : > { %1744 = vmatprep.mubr.bf16.mxu1 %v1427_v25  ;;  %3524 = vmatmul.mubr.bf16.gmra.mrb[48].mxu0 %v1427_v25  ;;  %v3751_v26 = vld [vmem:[%s5145_s4 + $0x220] sm:$0xff]  }
 0x227   : > { %v1394_v28 = vshrl.u32 %v1159_v44, 16  ;;  %1745 = vmatmul.mubr.bf16.gmra.mrb[56].mxu1 %v1426_v27  ;;  %v1397_v31 = vshll.u32 %v1159_v44, 16  ;;  %v3730_v44 = vld [vmem:[%s5145_s4 + $0x1a0] sm:$0xff]  }
 0x228   : > { %v4891_v15 = vld [vmem:[%s5146_s5] ss:$0 sm:$0xff] }
 0x229   : > { %v1396_v36 = vrot.slane %v1394_v28, 7  ;;  %v1446_v39 = vrot.slane %v1397_v31, 1 }
 0x22b   : > { %v1399_v40 = vor.u32 %v1397_v31, %v1396_v36  ;;  %v4645_v22 = vor.u32 %v1446_v39, %v1394_v28  ;;  %v3737_v28 = vld [vmem:[%s5145_s4 + $0x1f0] sm:$0xff]   ;;  %v3741_v36 = vld [vmem:[%s5145_s4 + $0x1f8] sm:$0xff]  }
 0x22c   : > { %v3738_v31 = vld [vmem:[%s5145_s4 + $0x1b0] sm:$0xff]   ;;  %v3742_v39 = vld [vmem:[%s5145_s4 + $0x1b8] sm:$0xff]  }
 0x22d   : > { %v1428_v1 = vsel %vm4416_vm1, 0, %v1399_v40  ;;  %v1080_v40 = vadd.s32 9, %v4369_v21 }
 0x22e   : > { %1752 = vmatprep.mubr.bf16.mxu1 %v1428_v1  ;;  %3527 = vmatprep.mubr.bf16.mxu0 %v1428_v1 }
 0x22f   : > { %1753 = vmatmul.mubr.bf16.gmra.mrb[60].mxu1 %v1427_v25  ;;  %v3733_v25 = vld [vmem:[%s5145_s4 + $0x1e8] sm:$0xff]   ;;  %vm1090_vm6 = vcmp.ge.s32.totalorder %v1080_v40, 0  ;;  %vm1100_vm7 = vcmp.lt.s32.totalorder %v1080_v40, 16 }
 0x230   : > { %3547 = vmatprep.mubr.msk.bf16.mxu1 %vm4652_vm15, %v4426_v5  ;;  %vm1110_vm10 = vmand %vm1090_vm6, %vm1100_vm7 }
 0x237   : > { %3548 = vmatmul.mubr.msk.bf16.vlgmr.msra.gmra.mrb[64].mxu1 %vm4662_vm4, %v4458_v53 }
 0x238   : > { %3551 = vmatprep.mubr.msk.bf16.mxu1 %vm4672_vm0, %v4490_v12  ;;  %3420 = vmatpush3.bf16.msra.mxu1 %v3716_v57 }
 0x239   : > { %3421 = vmatprep.subr.bf16.mxu1 %v3717_v13 }
 0x23c   : > { %3422 = vmatpush3.bf16.msra.mxu1 %v3718_v59 }
 0x23d   : > { %3423 = vmatprep.subr.bf16.mxu1 %v3721_v23 }
 0x23f   : > { %3552 = vmatmul.mubr.msk.bf16.gmra.mrb[68].mxu1 %vm4694_vm5, %v4531_v60 }
 0x240   : > { %3555 = vmatprep.mubr.msk.bf16.mxu1 %vm4704_vm9, %v4572_v56  ;;  %3424 = vmatpush3.bf16.msra.mxu1 %v3722_v47 }
 0x241   : > { %3425 = vmatprep.subr.bf16.mxu1 %v3725_v7 }
 0x244   : > { %3426 = vmatpush3.bf16.msra.mxu1 %v3726_v34 }
 0x245   : > { %3427 = vmatprep.subr.bf16.mxu1 %v3729_v4 }
 0x247   : > { %3556 = vmatmul.mubr.msk.bf16.gmra.mrb[72].mxu1 %vm4726_vm13, %v4607_v54 }
 0x248   : > { %3559 = vmatprep.mubr.msk.bf16.mxu1 %vm5148_vm2, %v4640_v6  ;;  %3428 = vmatpush3.bf16.msra.mxu1 %v3730_v44  ;;  %vm3102_vm2 = vmpackc.low %vm1110_vm10, %vm1110_vm10 }
 0x249   : > { %3429 = vmatprep.subr.bf16.mxu1 %v3733_v25 }
 0x24c   : > { %3430 = vmatpush3.bf16.msra.mxu1 %v3734_v11 }
 0x24d   : > { %3431 = vmatprep.subr.bf16.mxu1 %v3737_v28  ;;  %v1463_v28 = vsel %vm4767_vm14, %v4420_v48, 0  ;;  %v1464_v48 = vsel %vm4767_vm14, %v4452_v14, 0  ;;  %v1466_v14 = vsel %vm4767_vm14, %v4525_v16, 0  ;;  %v3753_v16 = vld [vmem:[%s5145_s4 + $0x230] sm:$0xff]  }
 0x250   : > { %3432 = vmatpush3.bf16.msra.mxu1 %v3738_v31 }
 0x251   : > { %3433 = vmatprep.subr.bf16.mxu1 %v3741_v36 }
 0x254   : > { %3434 = vmatpush3.bf16.msra.mxu1 %v3742_v39 }
 0x25b   : > { %v1043_v1 = vpop.f32.mrb[36].mxu0 }
 0x25c   : > { %v1044_v57 = vadd.f32 %v4367_v9, %v1043_v1  ;;  %v1045_v13 = vpop.f32.mrb[37].mxu0 }
 0x25d   : > { %v1046_v59 = vpop.f32.mrb[38].mxu0  ;;  %v1462_v13 = vsel %vm4767_vm14, %v4397_v8, 0  ;;  %v3748_v8 = vld [vmem:[%s5145_s4 + $0x208] sm:$0xff]  }
 0x25e   : > { %v1068_v23 = vmax.f32 %v1044_v57, 0.0  ;;  %v1047_v47 = vadd.f32 %v4367_v9, %v1046_v59  ;;  %v1048_v7 = vpop.f32.mrb[39].mxu0  ;;  %v1283_v59 = vadd.f32 %v4891_v15, %v4405_v45  ;;  %v1278_v45 = vadd.f32 %v4891_v15, %v4389_v51 }
 0x260   : > { %v1069_v34 = vmax.f32 %v1047_v47, 0.0  ;;  %v1149_v4 = vsel %vm1110_vm10, %v1068_v23, 0.0 }
 0x262   : > { %v1150_v44 = vsel %vm1110_vm10, %v1069_v34, 0.0  ;;  %v3103_v25 = vpack.c.bf16 %v1069_v34, %v1068_v23  ;;  %v1275_v34 = vadd.f32 %v4891_v15, %v4386_v33 }
 0x263   : > { %v1160_v11 = vpack.c.bf16 %v1150_v44, %v1149_v4 }
 0x264   : > { %3560 = vmatmul.mubr.msk.bf16.gmra.mrb[76].mxu1 %vm3102_vm2, %v3103_v25 }
 0x265   : > { %v1401_v9 = vshrl.u32 %v1160_v11, 16  ;;  %2502 = vmatprep.mubr.bf16.mxu1 %v1463_v28  ;;  %v1404_v31 = vshll.u32 %v1160_v11, 16  ;;  %v1286_v11 = vadd.f32 %v4891_v15, %v4408_v52 }
 0x267   : > { %v1403_v36 = vrot.slane %v1401_v9, 7  ;;  %v1448_v39 = vrot.slane %v1404_v31, 1 }
 0x269   : > { %v1406_v40 = vor.u32 %v1404_v31, %v1403_v36  ;;  %v4774_v1 = vor.u32 %v1448_v39, %v1401_v9 }
 0x26b   : > { %v1429_v57 = vsel %vm4416_vm1, 0, %v1406_v40  ;;  %vm3036_vm1 = vmpackc.low %vm4375_vm8, %vm4375_vm8  ;;  %vm5185_vm8 = vnez %v5170_v18 }
 0x26c   : > { %3528 = vmatmul.mubr.bf16.gmra.mrb[52].mxu0 %v1429_v57  ;;  %2503 = vmatmul.mubr.bf16.vlgmr.msra.gmra.mrb[80].mxu1 %v1462_v13  ;;  %vm5186_vm11 = vmpackc.low %vm5185_vm8, %vm5185_vm8 }
 0x26d   : > { %3035 = vmatprep.mubr.msk.bf16.mxu0 %vm3033_vm3, %v4403_v43  ;;  %2510 = vmatprep.mubr.bf16.mxu1 %v1464_v48 }
 0x274   : > { %3038 = vmatmul.mubr.msk.bf16.vlgmr.msra.gmra.mrb[56].mxu0 %vm3036_vm1, %v4384_v30  ;;  %2511 = vmatmul.mubr.bf16.gmra.mrb[84].mxu1 %v1463_v28  ;;  %v3750_v30 = vld [vmem:[%s5145_s4 + $0x218] sm:$0xff]  }
 0x275   : > { %3564 = vmatpush3.bf16.msra.mxu0 %v4626_v42  ;;  %3041 = vmatprep.mubr.msk.bf16.mxu0 %vm4652_vm15, %v4426_v5 }
 0x276   : > { %2518 = vmatprep.mubr.bf16.mxu1 %v1465_v63  ;;  %3565 = vmatprep.subr.bf16.mxu0 %v3748_v8 }
 0x279   : > { %3566 = vmatpush3.bf16.msra.mxu0 %v3748_v8 }
 0x27a   : > { %3567 = vmatprep.subr.bf16.mxu0 %v3749_v61 }
 0x27c   : > { %3044 = vmatmul.mubr.msk.bf16.gmra.mrb[60].mxu0 %vm3033_vm3, %v4403_v43  ;;  %2519 = vmatmul.mubr.bf16.gmra.mrb[88].mxu1 %v1464_v48  ;;  %v1467_v43 = vsel %vm4767_vm14, %v4566_v2, 0  ;;  %v1468_v2 = vsel %vm4767_vm14, %v4601_v50, 0  ;;  %v1470_v50 = vsel %vm4767_vm14, %v4645_v22, 0 }
 0x27d   : > { %3047 = vmatprep.mubr.msk.bf16.mxu0 %vm4662_vm4, %v4458_v53  ;;  %2526 = vmatprep.mubr.bf16.mxu1 %v1466_v14 }
 0x27e   : > { %3568 = vmatpush3.bf16.msra.mxu0 %v3749_v61 }
 0x27f   : > { %3569 = vmatprep.subr.bf16.mxu0 %v3750_v30 }
 0x282   : > { %3570 = vmatpush3.bf16.msra.mxu0 %v3750_v30 }
 0x283   : > { %3571 = vmatprep.subr.bf16.mxu0 %v3751_v26 }
 0x284   : > { %3050 = vmatmul.mubr.msk.bf16.gmra.mrb[64].mxu0 %vm4652_vm15, %v4426_v5  ;;  %2527 = vmatmul.mubr.bf16.gmra.mrb[92].mxu1 %v1465_v63  ;;  %v3754_v5 = vld [vmem:[%s5145_s4 + $0x238] sm:$0xff]  }
 0x285   : > { %3053 = vmatprep.mubr.msk.bf16.mxu0 %vm4672_vm0, %v4490_v12  ;;  %2534 = vmatprep.mubr.bf16.mxu1 %v1467_v43 }
 0x286   : > { %3572 = vmatpush3.bf16.msra.mxu0 %v3751_v26  ;;  %v1299_v26 = vadd.f32 %v4891_v15, %v4460_v46  ;;  %v1294_v46 = vadd.f32 %v4891_v15, %v4438_v32 }
 0x287   : > { %3573 = vmatprep.subr.bf16.mxu0 %v3752_v41 }
 0x28a   : > { %3574 = vmatpush3.bf16.msra.mxu0 %v3752_v41 }
 0x28b   : > { %3575 = vmatprep.subr.bf16.mxu0 %v3753_v16 }
 0x28c   : > { %3056 = vmatmul.mubr.msk.bf16.gmra.mrb[68].mxu0 %vm4662_vm4, %v4458_v53  ;;  %2535 = vmatmul.mubr.bf16.gmra.mrb[96].mxu1 %v1466_v14  ;;  %v1469_v53 = vsel %vm4767_vm14, %v4634_v10, 0 }
 0x28d   : > { %3059 = vmatprep.mubr.msk.bf16.mxu0 %vm4694_vm5, %v4531_v60  ;;  %2542 = vmatprep.mubr.bf16.mxu1 %v1468_v2 }
 0x28e   : > { %3576 = vmatpush3.bf16.msra.mxu0 %v3753_v16  ;;  %v1291_v16 = vadd.f32 %v4891_v15, %v4428_v24 }
 0x28f   : > { %3577 = vmatprep.subr.bf16.mxu0 %v3754_v5 }
 0x292   : > { %3578 = vmatpush3.bf16.msra.mxu0 %v3754_v5 }
 0x294   : > { %3062 = vmatmul.mubr.msk.bf16.gmra.mrb[72].mxu0 %vm4672_vm0, %v4490_v12  ;;  %2543 = vmatmul.mubr.bf16.gmra.mrb[100].mxu1 %v1467_v43 }
 0x295   : > { %3065 = vmatprep.mubr.msk.bf16.mxu0 %vm4704_vm9, %v4572_v56  ;;  %2550 = vmatprep.mubr.bf16.mxu1 %v1469_v53 }
 0x29c   : > { %3068 = vmatmul.mubr.msk.bf16.gmra.mrb[76].mxu0 %vm4694_vm5, %v4531_v60  ;;  %2551 = vmatmul.mubr.bf16.gmra.mrb[104].mxu1 %v1468_v2 }
 0x29d   : > { %3071 = vmatprep.mubr.msk.bf16.mxu0 %vm4726_vm13, %v4607_v54  ;;  %2558 = vmatprep.mubr.bf16.mxu1 %v1470_v50 }
 0x2a4   : > { %3074 = vmatmul.mubr.msk.bf16.gmra.mrb[80].mxu0 %vm4704_vm9, %v4572_v56  ;;  %2559 = vmatmul.mubr.bf16.gmra.mrb[108].mxu1 %v1469_v53  ;;  %v1471_v56 = vsel %vm4767_vm14, %v4774_v1, 0 }
 0x2a5   : > { %3077 = vmatprep.mubr.msk.bf16.mxu0 %vm5186_vm11, %v4640_v6 }
 0x2ac   : > { %3080 = vmatmul.mubr.msk.bf16.gmra.mrb[84].mxu0 %vm4726_vm13, %v4607_v54 }
 0x2ad   : > { %3579 = vmatprep.mubr.bf16.mxu0 %v1464_v48 }
 0x2b4   : > { %3580 = vmatmul.mubr.bf16.vlgmr.msra.gmra.mrb[88].mxu0 %v1465_v63 }
 0x2b5   : > { %3583 = vmatprep.mubr.bf16.mxu0 %v1466_v14 }
 0x2bc   : > { %3584 = vmatmul.mubr.bf16.gmra.mrb[92].mxu0 %v1467_v43 }
 0x2bd   : > { %3587 = vmatprep.mubr.bf16.mxu0 %v1468_v2 }
 0x2c4   : > { %3588 = vmatmul.mubr.bf16.gmra.mrb[96].mxu0 %v1469_v53 }
 0x2c5   : > { %3591 = vmatprep.mubr.bf16.mxu0 %v1470_v50  ;;  %v1302_v50 = vadd.f32 %v4891_v15, %v4468_v55 }
 0x2ca   : > { %v3275_v12 = vpop.f32.mrb[32].mxu1 }
 0x2cb   : > { %v3276_v60 = vpop.f32.mrb[33].mxu1 }
 0x2cc   : > { %v3277_v42 = vadd.f32 %v3276_v60, %v3275_v12  ;;  %v3278_v18 = vpop.f32.mrb[34].mxu1  ;;  %3592 = vmatmul.mubr.bf16.gmra.mrb[100].mxu0 %v1471_v56 }
 0x2cd   : > { %v3279_v10 = vpop.f32.mrb[35].mxu1 }
 0x2ce   : > { %v3280_v6 = vadd.f32 %v3279_v10, %v3278_v18 }
 0x2d2   : > { %v3281_v22 = vpop.f32.mrb[36].mxu1 }
 0x2d3   : > { %v3282_v54 = vpop.f32.mrb[37].mxu1 }
 0x2d4   : > { %v3283_v38 = vadd.f32 %v3282_v54, %v3281_v22  ;;  %v3284_v27 = vpop.f32.mrb[38].mxu1 }
 0x2d5   : > { %v3285_v19 = vpop.f32.mrb[39].mxu1 }
 0x2d6   : > { %v3286_v49 = vadd.f32 %v3285_v19, %v3284_v27 }
 0x2d9   : > { %v3517_v58 = vpop.f32.mrb[40].mxu0 }
 0x2da   : > { %v1804_v23 = vadd.f32 %v3517_v58, %v3283_v38  ;;  %v3287_v47 = vpop.f32.mrb[40].mxu1  ;;  %v1795_v7 = vpop.f32.mrb[41].mxu0 }
 0x2db   : > { %v1796_v4 = vadd.f32 %v3277_v42, %v1795_v7  ;;  %v3288_v44 = vpop.f32.mrb[41].mxu1  ;;  %v3518_v25 = vpop.f32.mrb[42].mxu0 }
 0x2dc   : > { %v4899_v21 = vadd.f32 %v1804_v23, %v1283_v59  ;;  %v3289_v28 = vadd.f32 %v3288_v44, %v3287_v47  ;;  %v1807_v9 = vadd.f32 %v3518_v25, %v3286_v49  ;;  %v3290_v31 = vpop.f32.mrb[42].mxu1  ;;  %v1798_v36 = vpop.f32.mrb[43].mxu0  ;;  %v1315_v47 = vadd.f32 %v4891_v15, %v4536_v17 }
 0x2dd   : > { %v4903_v39 = vadd.f32 %v1796_v4, %v1275_v34  ;;  %v1799_v40 = vadd.f32 %v3280_v6, %v1798_v36  ;;  %v3291_v1 = vpop.f32.mrb[43].mxu1  ;;  %v1307_v4 = vadd.f32 %v4891_v15, %v4495_v0  ;;  %v1310_v17 = vadd.f32 %v4891_v15, %v4503_v3 }
 0x2de   : > { %v4905_v33 = vadd.f32 %v1807_v9, %v1286_v11  ;;  %v3292_v57 = vadd.f32 %v3291_v1, %v3290_v31 }
 0x2df   : > { %v4907_v13 = vadd.f32 %v1799_v40, %v1278_v45 }
 0x2e2   : > { %v3293_v48 = vpop.f32.mrb[44].mxu1 }
 0x2e3   : > { %v3294_v52 = vpop.f32.mrb[45].mxu1 }
 0x2e4   : > { %v3295_v8 = vadd.f32 %v3294_v52, %v3293_v48  ;;  %v3296_v63 = vpop.f32.mrb[46].mxu1 }
 0x2e5   : > { %v3297_v61 = vpop.f32.mrb[47].mxu1 }
 0x2e6   : > { %v3298_v30 = vadd.f32 %v3297_v61, %v3296_v63 }
 0x2e9   : > { %v3521_v14 = vpop.f32.mrb[44].mxu0 }
 0x2ea   : > { %v1820_v51 = vadd.f32 %v3521_v14, %v3295_v8  ;;  %v3299_v41 = vpop.f32.mrb[48].mxu1  ;;  %v1811_v43 = vpop.f32.mrb[45].mxu0 }
 0x2eb   : > { %v1812_v5 = vadd.f32 %v3289_v28, %v1811_v43  ;;  %v3300_v2 = vpop.f32.mrb[49].mxu1  ;;  %v3522_v53 = vpop.f32.mrb[46].mxu0  ;;  %v1318_v28 = vadd.f32 %v4891_v15, %v4544_v35 }
 0x2ec   : > { %v4915_v12 = vadd.f32 %v1820_v51, %v1299_v26  ;;  %v3301_v60 = vadd.f32 %v3300_v2, %v3299_v41  ;;  %v1823_v56 = vadd.f32 %v3522_v53, %v3298_v30  ;;  %v3302_v42 = vpop.f32.mrb[50].mxu1  ;;  %v1814_v18 = vpop.f32.mrb[47].mxu0 }
 0x2ed   : > { %v4919_v10 = vadd.f32 %v1812_v5, %v1291_v16  ;;  %v1815_v6 = vadd.f32 %v3292_v57, %v1814_v18  ;;  %v3303_v22 = vpop.f32.mrb[51].mxu1 }
 0x2ee   : > { %v4921_v24 = vadd.f32 %v1823_v56, %v1302_v50  ;;  %v3304_v54 = vadd.f32 %v3303_v22, %v3302_v42 }
 0x2ef   : > { %v4923_v38 = vadd.f32 %v1815_v6, %v1294_v46 }
 0x2f2   : > { %v3305_v27 = vpop.f32.mrb[52].mxu1 }
 0x2f3   : > { %v3306_v55 = vpop.f32.mrb[53].mxu1 }
 0x2f4   : > { %v3307_v19 = vadd.f32 %v3306_v55, %v3305_v27  ;;  %v3308_v49 = vpop.f32.mrb[54].mxu1  ;;  %v1331_v55 = vadd.f32 %v4891_v15, %v4612_v20  ;;  %v1326_v20 = vadd.f32 %v4891_v15, %v4582_v29 }
 0x2f5   : > { %v3309_v58 = vpop.f32.mrb[55].mxu1 }
 0x2f6   : > { %v3310_v59 = vadd.f32 %v3309_v58, %v3308_v49 }
 0x2f9   : > { %v3525_v23 = vpop.f32.mrb[48].mxu0 }
 0x2fa   : > { %v1836_v32 = vadd.f32 %v3525_v23, %v3307_v19  ;;  %v3311_v7 = vpop.f32.mrb[56].mxu1  ;;  %v1827_v34 = vpop.f32.mrb[49].mxu0 }
 0x2fb   : > { %v1828_v44 = vadd.f32 %v3301_v60, %v1827_v34  ;;  %v3312_v25 = vpop.f32.mrb[57].mxu1  ;;  %v3526_v11 = vpop.f32.mrb[50].mxu0  ;;  %v1334_v34 = vadd.f32 %v4891_v15, %v4617_v37 }
 0x2fc   : > { %v4931_v9 = vadd.f32 %v1836_v32, %v1315_v47  ;;  %v3313_v31 = vadd.f32 %v3312_v25, %v3311_v7  ;;  %v1839_v36 = vadd.f32 %v3526_v11, %v3310_v59  ;;  %v3314_v45 = vpop.f32.mrb[58].mxu1  ;;  %v1830_v40 = vpop.f32.mrb[51].mxu0  ;;  %v1323_v59 = vadd.f32 %v4891_v15, %v4577_v62 }
 0x2fd   : > { %v4935_v1 = vadd.f32 %v1828_v44, %v1307_v4  ;;  %v1831_v57 = vadd.f32 %v3304_v54, %v1830_v40  ;;  %v3315_v48 = vpop.f32.mrb[59].mxu1 }
 0x2fe   : > { %v4937_v0 = vadd.f32 %v1839_v36, %v1318_v28  ;;  %v3316_v52 = vadd.f32 %v3315_v48, %v3314_v45 }
 0x2ff   : > { %v4939_v8 = vadd.f32 %v1831_v57, %v1310_v17 }
 0x302   : > { %v3317_v63 = vpop.f32.mrb[60].mxu1 }
 0x303   : > { %v3318_v35 = vpop.f32.mrb[61].mxu1 }
 0x304   : > { %v3319_v61 = vadd.f32 %v3318_v35, %v3317_v63  ;;  %v3320_v30 = vpop.f32.mrb[62].mxu1 }
 0x305   : > { %v3321_v14 = vpop.f32.mrb[63].mxu1 }
 0x306   : > { %v3322_v26 = vadd.f32 %v3321_v14, %v3320_v30 }
 0x30a   : > { %v4941_v51 = vpop.f32.mrb[64].mxu1 }
 0x30b   : > { %v2198_v41 = vpop.f32.mrb[65].mxu1 }
 0x30c   : > { %v4943_v43 = vpop.f32.mrb[66].mxu1 }
 0x30d   : > { %v2201_v3 = vpop.f32.mrb[67].mxu1 }
 0x312   : > { %v4945_v16 = vpop.f32.mrb[68].mxu1 }
 0x313   : > { %v4947_v5 = vpop.f32.mrb[69].mxu1 }
 0x314   : > { %v4949_v2 = vpop.f32.mrb[70].mxu1 }
 0x315   : > { %v4951_v53 = vpop.f32.mrb[71].mxu1 }
 0x31a   : > { %v4953_v50 = vpop.f32.mrb[72].mxu1 }
 0x31b   : > { %v4955_v60 = vpop.f32.mrb[73].mxu1 }
 0x31c   : > { %v4957_v56 = vpop.f32.mrb[74].mxu1 }
 0x31d   : > { %v4959_v42 = vpop.f32.mrb[75].mxu1 }
 0x337   : > { %v4961_v18 = vpop.f32.mrb[76].mxu1 }
 0x338   : > { %v4963_v46 = vpop.f32.mrb[77].mxu1 }
 0x339   : > { %v4965_v6 = vpop.f32.mrb[78].mxu1 }
 0x33a   : > { %v4967_v22 = vpop.f32.mrb[79].mxu1 }
 0x33f   : > { %v3529_v54 = vpop.f32.mrb[52].mxu0  ;;  %v3435_v27 = vpop.f32.mrb[80].mxu1 }
 0x340   : > { %v1852_v19 = vadd.f32 %v3529_v54, %v3319_v61  ;;  %v1843_v49 = vpop.f32.mrb[53].mxu0  ;;  %v3436_v58 = vpop.f32.mrb[81].mxu1 }
 0x341   : > { %v1844_v23 = vadd.f32 %v3313_v31, %v1843_v49  ;;  %v4973_v47 = vadd.f32 %v3436_v58, %v3435_v27  ;;  %v3530_v32 = vpop.f32.mrb[54].mxu0  ;;  %v3438_v7 = vpop.f32.mrb[82].mxu1 }
 0x342   : > { %v4977_v4 = vadd.f32 %v1852_v19, %v1331_v55  ;;  %v1855_v44 = vadd.f32 %v3530_v32, %v3322_v26  ;;  %v1846_v25 = vpop.f32.mrb[55].mxu0  ;;  %v3439_v11 = vpop.f32.mrb[83].mxu1 }
 0x343   : > { %v4981_v28 = vadd.f32 %v1844_v23, %v1323_v59  ;;  %v1847_v36 = vadd.f32 %v3316_v52, %v1846_v25  ;;  %v4983_v62 = vadd.f32 %v3439_v11, %v3438_v7 }
 0x344   : > { %v4985_v31 = vadd.f32 %v1855_v44, %v1334_v34 }
 0x345   : > { %v4987_v45 = vadd.f32 %v1847_v36, %v1326_v20 }
 0x347   : > { %v3355_v40 = vpop.f32.mrb[56].mxu0  ;;  %v3441_v17 = vpop.f32.mrb[84].mxu1 }
 0x348   : > { %v3356_v37 = vpop.f32.mrb[57].mxu0  ;;  %v3442_v57 = vpop.f32.mrb[85].mxu1 }
 0x349   : > { %v3357_v48 = vadd.f32 %v3356_v37, %v3355_v40  ;;  %v4989_v63 = vadd.f32 %v3442_v57, %v3441_v17  ;;  %v3358_v35 = vpop.f32.mrb[58].mxu0  ;;  %v3444_v61 = vpop.f32.mrb[86].mxu1 }
 0x34a   : > { %v3359_v30 = vpop.f32.mrb[59].mxu0  ;;  %v3445_v29 = vpop.f32.mrb[87].mxu1 }
 0x34b   : > { %v2199_v15 = vadd.f32 %v3357_v48, %v2198_v41  ;;  %v3360_v14 = vadd.f32 %v3359_v30, %v3358_v35  ;;  %v4991_v52 = vadd.f32 %v3445_v29, %v3444_v61 }
 0x34d   : > { %v2202_v26 = vadd.f32 %v3360_v14, %v2201_v3  ;;  %v4994_v54 = vadd.f32 %v2199_v15, %v4903_v39 }
 0x34f   : > { %v3361_v27 = vpop.f32.mrb[60].mxu0  ;;  %v3447_v55 = vpop.f32.mrb[88].mxu1  ;;  %v4997_v19 = vadd.f32 %v2202_v26, %v4907_v13 }
 0x350   : > { %v3362_v49 = vpop.f32.mrb[61].mxu0  ;;  %v3448_v58 = vpop.f32.mrb[89].mxu1 }
 0x351   : > { %v3363_v59 = vadd.f32 %v3362_v49, %v3361_v27  ;;  %v4999_v23 = vadd.f32 %v3448_v58, %v3447_v55  ;;  %v3364_v32 = vpop.f32.mrb[62].mxu0  ;;  %v3450_v7 = vpop.f32.mrb[90].mxu1 }
 0x352   : > { %v3365_v41 = vpop.f32.mrb[63].mxu0  ;;  %v3451_v34 = vpop.f32.mrb[91].mxu1 }
 0x353   : > { %v2207_v44 = vadd.f32 %v4941_v51, %v3363_v59  ;;  %v3366_v3 = vadd.f32 %v3365_v41, %v3364_v32  ;;  %v5002_v25 = vadd.f32 %v3451_v34, %v3450_v7 }
 0x355   : > { %v2210_v39 = vadd.f32 %v4943_v43, %v3366_v3  ;;  %v5006_v11 = vadd.f32 %v2207_v44, %v4899_v21 }
 0x357   : > { %v3367_v13 = vpop.f32.mrb[64].mxu0  ;;  %v3453_v20 = vpop.f32.mrb[92].mxu1  ;;  %v5009_v36 = vadd.f32 %v2210_v39, %v4905_v33 }
 0x358   : > { %v3368_v40 = vpop.f32.mrb[65].mxu0  ;;  %v3454_v17 = vpop.f32.mrb[93].mxu1 }
 0x359   : > { %v3369_v37 = vadd.f32 %v3368_v40, %v3367_v13  ;;  %v5011_v57 = vadd.f32 %v3454_v17, %v3453_v20  ;;  %v3370_v48 = vpop.f32.mrb[66].mxu0  ;;  %v3456_v51 = vpop.f32.mrb[94].mxu1 }
 0x35a   : > { %v3371_v35 = vpop.f32.mrb[67].mxu0  ;;  %v3457_v61 = vpop.f32.mrb[95].mxu1 }
 0x35b   : > { %v2215_v30 = vadd.f32 %v3369_v37, %v4947_v5  ;;  %v3372_v43 = vadd.f32 %v3371_v35, %v3370_v48  ;;  %v5014_v29 = vadd.f32 %v3457_v61, %v3456_v51 }
 0x35d   : > { %v2218_v21 = vadd.f32 %v3372_v43, %v4951_v53  ;;  %v5018_v15 = vadd.f32 %v2215_v30, %v4919_v10 }
 0x35f   : > { %v3373_v33 = vpop.f32.mrb[68].mxu0  ;;  %v3459_v14 = vpop.f32.mrb[96].mxu1  ;;  %v5021_v26 = vadd.f32 %v2218_v21, %v4923_v38 }
 0x360   : > { %v3374_v27 = vpop.f32.mrb[69].mxu0  ;;  %v3460_v55 = vpop.f32.mrb[97].mxu1 }
 0x361   : > { %v3375_v49 = vadd.f32 %v3374_v27, %v3373_v33  ;;  %v5023_v58 = vadd.f32 %v3460_v55, %v3459_v14  ;;  %v3376_v59 = vpop.f32.mrb[70].mxu0  ;;  %v3462_v5 = vpop.f32.mrb[98].mxu1 }
 0x362   : > { %v3377_v32 = vpop.f32.mrb[71].mxu0  ;;  %v3463_v7 = vpop.f32.mrb[99].mxu1 }
 0x363   : > { %v2223_v41 = vadd.f32 %v4945_v16, %v3375_v49  ;;  %v3378_v53 = vadd.f32 %v3377_v32, %v3376_v59  ;;  %v5026_v34 = vadd.f32 %v3463_v7, %v3462_v5 }
 0x365   : > { %v2226_v10 = vadd.f32 %v4949_v2, %v3378_v53  ;;  %v5030_v44 = vadd.f32 %v2223_v41, %v4915_v12 }
 0x367   : > { %v3379_v38 = vpop.f32.mrb[72].mxu0  ;;  %v3465_v3 = vpop.f32.mrb[100].mxu1  ;;  %v5033_v39 = vadd.f32 %v2226_v10, %v4921_v24 }
 0x368   : > { %v3380_v13 = vpop.f32.mrb[73].mxu0  ;;  %v3466_v20 = vpop.f32.mrb[101].mxu1 }
 0x369   : > { %v3381_v40 = vadd.f32 %v3380_v13, %v3379_v38  ;;  %v5035_v17 = vadd.f32 %v3466_v20, %v3465_v3  ;;  %v3382_v37 = vpop.f32.mrb[74].mxu0  ;;  %v3468_v16 = vpop.f32.mrb[102].mxu1 }
 0x36a   : > { %v3383_v48 = vpop.f32.mrb[75].mxu0  ;;  %v3469_v51 = vpop.f32.mrb[103].mxu1 }
 0x36b   : > { %v2231_v35 = vadd.f32 %v3381_v40, %v4955_v60  ;;  %v3384_v2 = vadd.f32 %v3383_v48, %v3382_v37  ;;  %v5038_v61 = vadd.f32 %v3469_v51, %v3468_v16 }
 0x36d   : > { %v2234_v12 = vadd.f32 %v3384_v2, %v4959_v42  ;;  %v5042_v30 = vadd.f32 %v2231_v35, %v4935_v1 }
 0x36f   : > { %v3385_v24 = vpop.f32.mrb[76].mxu0  ;;  %v3471_v43 = vpop.f32.mrb[104].mxu1  ;;  %v5045_v21 = vadd.f32 %v2234_v12, %v4939_v8 }
 0x370   : > { %v3386_v33 = vpop.f32.mrb[77].mxu0  ;;  %v3472_v14 = vpop.f32.mrb[105].mxu1 }
 0x371   : > { %v3387_v27 = vadd.f32 %v3386_v33, %v3385_v24  ;;  %v5047_v55 = vadd.f32 %v3472_v14, %v3471_v43  ;;  %v3388_v49 = vpop.f32.mrb[78].mxu0  ;;  %v3474_v60 = vpop.f32.mrb[106].mxu1 }
 0x372   : > { %v3389_v59 = vpop.f32.mrb[79].mxu0  ;;  %v3475_v5 = vpop.f32.mrb[107].mxu1 }
 0x373   : > { %v2239_v32 = vadd.f32 %v4953_v50, %v3387_v27  ;;  %v3390_v42 = vadd.f32 %v3389_v59, %v3388_v49  ;;  %v5050_v7 = vadd.f32 %v3475_v5, %v3474_v60 }
 0x375   : > { %v2242_v1 = vadd.f32 %v4957_v56, %v3390_v42  ;;  %v5054_v41 = vadd.f32 %v2239_v32, %v4931_v9 }
 0x377   : > { %v3391_v8 = vpop.f32.mrb[80].mxu0  ;;  %v3477_v53 = vpop.f32.mrb[108].mxu1  ;;  %v5057_v10 = vadd.f32 %v2242_v1, %v4937_v0 }
 0x378   : > { %v3392_v38 = vpop.f32.mrb[81].mxu0  ;;  %v3478_v3 = vpop.f32.mrb[109].mxu1 }
 0x379   : > { %v3393_v13 = vadd.f32 %v3392_v38, %v3391_v8  ;;  %v5059_v20 = vadd.f32 %v3478_v3, %v3477_v53  ;;  %v3394_v50 = vpop.f32.mrb[82].mxu0  ;;  %v3480_v40 = vpop.f32.mrb[110].mxu1 }
 0x37a   : > { %v3395_v37 = vpop.f32.mrb[83].mxu0  ;;  %v3481_v16 = vpop.f32.mrb[111].mxu1 }
 0x37b   : > { %v2247_v56 = vadd.f32 %v3393_v13, %v4963_v46  ;;  %v3396_v48 = vadd.f32 %v3395_v37, %v3394_v50  ;;  %v5062_v9 = vadd.f32 %v3481_v16, %v3480_v40 }
 0x37d   : > { %v2250_v51 = vadd.f32 %v3396_v48, %v4967_v22  ;;  %v5066_v0 = vadd.f32 %v2247_v56, %v4981_v28 }
 0x37f   : > { %v3397_v35 = vpop.f32.mrb[84].mxu0  ;;  %v5070_v2 = vadd.f32 %v2250_v51, %v4987_v45 }
 0x380   : > { %v3398_v12 = vpop.f32.mrb[85].mxu0 }
 0x381   : > { %v3399_v24 = vadd.f32 %v3398_v12, %v3397_v35  ;;  %v3400_v43 = vpop.f32.mrb[86].mxu0 }
 0x382   : > { %v3401_v33 = vpop.f32.mrb[87].mxu0 }
 0x383   : > { %v2255_v46 = vadd.f32 %v4961_v18, %v3399_v24  ;;  %v3402_v14 = vadd.f32 %v3401_v33, %v3400_v43 }
 0x385   : > { %v2258_v27 = vadd.f32 %v4965_v6, %v3402_v14  ;;  %v5075_v22 = vadd.f32 %v2255_v46, %v4977_v4 }
 0x387   : > { %v3581_v28 = vpop.f32.mrb[88].mxu0  ;;  %v5079_v49 = vadd.f32 %v2258_v27, %v4985_v31 }
 0x388   : > { %v2610_v45 = vadd.f32 %v3581_v28, %v4989_v63  ;;  %v2601_v60 = vpop.f32.mrb[89].mxu0 }
 0x389   : > { %v2602_v59 = vadd.f32 %v4973_v47, %v2601_v60  ;;  %v3582_v5 = vpop.f32.mrb[90].mxu0 }
 0x38a   : > { %v2666_v18 = vadd.f32 %v2610_v45, %v5006_v11  ;;  %v2613_v6 = vadd.f32 %v3582_v5, %v4991_v52  ;;  %v2604_v32 = vpop.f32.mrb[91].mxu0 }
 0x38b   : > { %v2664_v4 = vadd.f32 %v2602_v59, %v4994_v54  ;;  %v2605_v42 = vadd.f32 %v4983_v62, %v2604_v32 }
 0x38c   : > { %v2667_v31 = vadd.f32 %v2613_v6, %v5009_v36  ;;  %v2682_v63 = vmax.f32 %v2666_v18, 0.0 }
 0x38d   : > { %v2665_v1 = vadd.f32 %v2605_v42, %v4997_v19  ;;  %v2680_v53 = vmax.f32 %v2664_v4, 0.0 }
 0x38e   : > { %v2683_v8 = vmax.f32 %v2667_v31, 0.0 }
 0x38f   : > { %v2681_v47 = vmax.f32 %v2665_v1, 0.0  ;;  %v3585_v52 = vpop.f32.mrb[92].mxu0 }
 0x390   : > { %v3220_v54 = vpack.c.bf16 %v2683_v8, %v2682_v63  ;;  %v2626_v62 = vadd.f32 %v3585_v52, %v5011_v57  ;;  %v2617_v11 = vpop.f32.mrb[93].mxu0 }
 0x391   : > { %v3215_v38 = vpack.c.bf16 %v2681_v47, %v2680_v53  ;;  %v2618_v36 = vadd.f32 %v4999_v23, %v2617_v11  ;;  %v3586_v19 = vpop.f32.mrb[94].mxu0 }
 0x392   : > { %3252 = vst [vmem:[%s5092_s10 + $0x8] sm:$0xff] %v3220_v54   ;;  %v2670_v3 = vadd.f32 %v2626_v62, %v5030_v44  ;;  %v2629_v13 = vadd.f32 %v3586_v19, %v5014_v29  ;;  %v2620_v50 = vpop.f32.mrb[95].mxu0 }
 0x393   : > { %3216 = vst [vmem:[%s5092_s10] sm:$0xff] %v3215_v38   ;;  %v2668_v40 = vadd.f32 %v2618_v36, %v5018_v15  ;;  %v2621_v37 = vadd.f32 %v5002_v25, %v2620_v50 }
 0x394   : > { %v2671_v16 = vadd.f32 %v2629_v13, %v5033_v39  ;;  %v2686_v56 = vmax.f32 %v2670_v3, 0.0 }
 0x395   : > { %v2669_v57 = vadd.f32 %v2621_v37, %v5021_v26  ;;  %v2684_v48 = vmax.f32 %v2668_v40, 0.0 }
 0x396   : > { %v2687_v23 = vmax.f32 %v2671_v16, 0.0 }
 0x397   : > { %v2685_v51 = vmax.f32 %v2669_v57, 0.0  ;;  %v3589_v35 = vpop.f32.mrb[96].mxu0 }
 0x398   : > { %v3230_v44 = vpack.c.bf16 %v2687_v23, %v2686_v56  ;;  %v2642_v29 = vadd.f32 %v3589_v35, %v5035_v17  ;;  %v2633_v12 = vpop.f32.mrb[97].mxu0 }
 0x399   : > { %v3225_v24 = vpack.c.bf16 %v2685_v51, %v2684_v48  ;;  %v2634_v43 = vadd.f32 %v5023_v58, %v2633_v12  ;;  %v3590_v15 = vpop.f32.mrb[98].mxu0 }
 0x39a   : > { %3254 = vst [vmem:[%s5092_s10 + $0x18] sm:$0xff] %v3230_v44   ;;  %v2674_v25 = vadd.f32 %v2642_v29, %v5054_v41  ;;  %v2645_v39 = vadd.f32 %v3590_v15, %v5038_v61  ;;  %v2636_v26 = vpop.f32.mrb[99].mxu0 }
 0x39b   : > { %3253 = vst [vmem:[%s5092_s10 + $0x10] sm:$0xff] %v3225_v24   ;;  %v2672_v33 = vadd.f32 %v2634_v43, %v5042_v30  ;;  %v2637_v46 = vadd.f32 %v5026_v34, %v2636_v26 }
 0x39c   : > { %v2675_v14 = vadd.f32 %v2645_v39, %v5057_v10  ;;  %v2690_v27 = vmax.f32 %v2674_v25, 0.0 }
 0x39d   : > { %v2673_v17 = vadd.f32 %v2637_v46, %v5045_v21  ;;  %v2688_v28 = vmax.f32 %v2672_v33, 0.0 }
 0x39e   : > { %v2691_v58 = vmax.f32 %v2675_v14, 0.0 }
 0x39f   : > { %v2689_v45 = vmax.f32 %v2673_v17, 0.0  ;;  %v3593_v60 = vpop.f32.mrb[100].mxu0 }
 0x3a0   : > { %v3240_v41 = vpack.c.bf16 %v2691_v58, %v2690_v27  ;;  %v2658_v61 = vadd.f32 %v3593_v60, %v5059_v20  ;;  %v2649_v59 = vpop.f32.mrb[101].mxu0 }
 0x3a1   : > { %v3235_v5 = vpack.c.bf16 %v2689_v45, %v2688_v28  ;;  %v2650_v18 = vadd.f32 %v5047_v55, %v2649_v59  ;;  %v3594_v30 = vpop.f32.mrb[102].mxu0 }
 0x3a2   : > { %3256 = vst [vmem:[%s5092_s10 + $0x28] sm:$0xff] %v3240_v41   ;;  %v2678_v34 = vadd.f32 %v2658_v61, %v5075_v22  ;;  %v2661_v21 = vadd.f32 %v3594_v30, %v5062_v9  ;;  %v2652_v10 = vpop.f32.mrb[103].mxu0 }
 0x3a3   : > { %3255 = vst [vmem:[%s5092_s10 + $0x20] sm:$0xff] %v3235_v5   ;;  %v2676_v6 = vadd.f32 %v2650_v18, %v5066_v0  ;;  %v2653_v32 = vadd.f32 %v5050_v7, %v2652_v10 }
 0x3a4   : > { %v2679_v20 = vadd.f32 %v2661_v21, %v5079_v49  ;;  %v2694_v42 = vmax.f32 %v2678_v34, 0.0 }
 0x3a5   : > { %v2677_v4 = vadd.f32 %v2653_v32, %v5070_v2  ;;  %v2692_v31 = vmax.f32 %v2676_v6, 0.0 }
 0x3a6   : > { %v2695_v55 = vmax.f32 %v2679_v20, 0.0 }
 0x3a7   : > { %v2693_v1 = vmax.f32 %v2677_v4, 0.0 }
 0x3a8   : > { %v3250_v63 = vpack.c.bf16 %v2695_v55, %v2694_v42 }
 0x3a9   : > { %v3245_v8 = vpack.c.bf16 %v2693_v1, %v2692_v31 }
 0x3aa   : > { %3258 = vst [vmem:[%s5092_s10 + $0x38] sm:$0xff] %v3250_v63  }
 0x3ab   : > { %3257 = vst [vmem:[%s5092_s10 + $0x30] sm:$0xff] %v3245_v8  }
 0x3ac PF: > { %s16_s25 = sadd.s32 1, %s3793_s25   ;;  %s5187_s21 = smov %s3785_s23 }
 0x3ad   : > { %p13_p7 = scmp.ge.s32.totalorder %s16_s25, 6   ;;  %s5188_s22 = smov %s3789_s24 }
 0x3ae   : > { %s5189_s23 = smov %s5192_s26  ;;  %s5190_s24 = smov %s5196_s27 }
 0x3af   :  { %15 = sbr.rel (!%p13_p7) target bundleno = 3 (0x3), region = 77 }

</bundles_post_ra>
